<compile_context>
chip_gen: v5e
topology: v5e:2x2
jax: 0.10.0
libtpu: 0.0.40
codegen_flags: <defaults>
</compile_context>

<pallas_src>
import functools

import jax
import jax.numpy as jnp
from jax.experimental import pallas as pl
from jax.experimental.pallas import tpu as pltpu


def _round_up(x, m):
    return (x + m - 1) // m * m


def _sublane_align(dtype):
    # 32-bit dtypes pack 8 rows per vreg, 16-bit pack 16, 8-bit pack 32.
    return 8 * 4 // jnp.dtype(dtype).itemsize


# ----------------------------------------------------------------------------
# Fused decoder kernel: all ConvTranspose3d(k=2,s=2)+ReLU layers in one body.
# ----------------------------------------------------------------------------
def _make_fused_kernel(num_layers, cps_out, in_rows, row_tile, act_dtype):
    """cps_out[l]: lane-padded out-channels of layer l (multiple of 128).
       in_rows[l]: rows of the activation ENTERING layer l (= n_pad * 8**l).
       row_tile  : rows of the last layer's input handled per grid step."""

    def kernel(*refs):
        x_ref = refs[0]
        w_refs = [refs[1 + 2 * l] for l in range(num_layers)]
        b_refs = [refs[2 + 2 * l] for l in range(num_layers)]
        out_ref = refs[1 + 2 * num_layers]
        scratches = refs[2 + 2 * num_layers:]        # one per intermediate layer

        # --- Prologue: every layer except the last, run once (grid step 0).
        # Results persist in VMEM scratch across the row-tiled grid.
        @pl.when(pl.program_id(0) == 0)
        def _():
            a = x_ref[...]
            for l in range(num_layers - 1):
                m, cp = in_rows[l], cps_out[l]
                dst = scratches[l]
                for t in range(8):                   # per-tap matmul + direct store
                    acc = jnp.dot(a, w_refs[l][:, t * cp:(t + 1) * cp],
                                  preferred_element_type=jnp.float32)
                    val = jnp.maximum(acc + b_refs[l][:, t * cp:(t + 1) * cp], 0.0)
                    dst[pl.ds(t * m, m), :] = val.astype(act_dtype)
                a = dst[...]

        # --- Last layer: one row tile of its input per grid step.  Each of the
        # 8 taps is matmul'ed separately and stored straight into its row block
        # of the (8, row_tile, Cp_out) output tile (lane-dense, unmasked vst).
        l = num_layers - 1
        cp = cps_out[l]
        src = x_ref if num_layers == 1 else scratches[-1]
        start = pl.multiple_of(pl.program_id(0) * row_tile, 8)
        a = src[pl.ds(start, row_tile), :]
        for t in range(8):
            acc = jnp.dot(a, w_refs[l][:, t * cp:(t + 1) * cp],
                          preferred_element_type=jnp.float32)
            out_ref[t, :, :] = jnp.maximum(
                acc + b_refs[l][:, t * cp:(t + 1) * cp], 0.0).astype(out_ref.dtype)

    return kernel


# ----------------------------------------------------------------------------
# Host-side packing / unpacking glue (plain JAX, runs once per call)
# ----------------------------------------------------------------------------
def _pack_layer(w, b, cp_in, cp_out, compute_dtype):
    """ConvTranspose3d weight (C_in, C_out, 2,2,2) -> (Cp_in, 8*Cp_out) with column
    index = (kd*4 + kh*2 + kw) * Cp_out + o, zero-padded to lane multiples."""
    c_in, c_out = w.shape[0], w.shape[1]
    wt = jnp.transpose(w, (0, 2, 3, 4, 1))                  # (C_in, 2,2,2, C_out)
    w_pad = jnp.zeros((cp_in, 2, 2, 2, cp_out), jnp.float32)
    w_pad = w_pad.at[:c_in, :, :, :, :c_out].set(wt.astype(jnp.float32))
    w2 = w_pad.reshape(cp_in, 8 * cp_out).astype(compute_dtype)
    b_pad = jnp.zeros((cp_out,), jnp.float32).at[:c_out].set(b.astype(jnp.float32))
    b2 = jnp.tile(b_pad, 8).reshape(1, 8 * cp_out)          # f32 (added to f32 acc)
    return w2, b2


def upsample_net_forward_pallas(x, params, *, compute_dtype=jnp.float32,
                                out_dtype=jnp.float32, row_tile=None):
    """x: (N, latent_dim); params: list of (w, b) per block.
    Returns (N, n_features[-1], 2**L, 2**L, 2**L) in NCDHW (PyTorch layout)."""
    n, latent = x.shape
    num_layers = len(params)
    c_outs = [w.shape[1] for (w, _) in params]
    cps = [_round_up(latent, 128)] + [_round_up(c, 128) for c in c_outs]
    row_align = max(_sublane_align(compute_dtype), _sublane_align(out_dtype))
    n_pad = _round_up(n, row_align)
    in_rows = [n_pad * 8 ** l for l in range(num_layers)]
    m_last = in_rows[-1]
    itemsize_c = jnp.dtype(compute_dtype).itemsize
    itemsize_o = jnp.dtype(out_dtype).itemsize

    # Row tile of the last layer's input (output tile = 8 * row_tile rows, Cp lanes).
    if row_tile is None:
        row_tile = (4 << 20) // (8 * cps[-1] * itemsize_o)   # ~4 MiB output tiles
    row_tile = max(row_align, (min(int(row_tile), m_last) // row_align) * row_align)
    while m_last % row_tile:
        row_tile -= row_align
    grid = (m_last // row_tile,)

    # Zero-pad rows/channels; padded channels hit zero weight rows downstream,
    # padded rows are independent and sliced away before the final transpose.
    x_pad = jnp.zeros((n_pad, cps[0]), compute_dtype)
    x_pad = x_pad.at[:n, :latent].set(x.astype(compute_dtype))

    flat_inputs = [x_pad]
    in_specs = [pl.BlockSpec(x_pad.shape, lambda i: (0, 0))]
    flops = 0
    param_bytes = 0
    for l, (w, b) in enumerate(params):
        w2, b2 = _pack_layer(w, b, cps[l], cps[l + 1], compute_dtype)
        flat_inputs += [w2, b2]
        in_specs += [pl.BlockSpec(w2.shape, lambda i: (0, 0)),
                     pl.BlockSpec(b2.shape, lambda i: (0, 0))]
        flops += 2 * in_rows[l] * cps[l] * 8 * cps[l + 1]
        param_bytes += w2.size * itemsize_c + b2.size * 4

    out_spec = pl.BlockSpec((8, row_tile, cps[-1]), lambda i: (0, i, 0))
    scratch_shapes = [pltpu.VMEM((in_rows[l + 1], cps[l + 1]), compute_dtype)
                      for l in range(num_layers - 1)]

    out_bytes = 8 * m_last * cps[-1] * itemsize_o
    scratch_bytes = sum(in_rows[l + 1] * cps[l + 1] * itemsize_c
                        for l in range(num_layers - 1))
    out_tile_bytes = 8 * row_tile * cps[-1] * itemsize_o
    vmem_needed = (2 * (x_pad.size * itemsize_c + param_bytes)   # pipelined inputs
                   + scratch_bytes                                # resident activations
                   + 2 * out_tile_bytes                           # output double buffer
                   + 8 * row_tile * cps[-1] * 4)                  # f32 tap accumulators
    vmem_limit = int(min(max(int(vmem_needed * 1.5) + (2 << 20), 32 << 20), 100 << 20))

    kernel = _make_fused_kernel(num_layers, cps[1:], in_rows, row_tile, compute_dtype)
    out3 = pl.pallas_call(
        kernel,
        out_shape=jax.ShapeDtypeStruct((8, m_last, cps[-1]), out_dtype),
        grid_spec=pltpu.PrefetchScalarGridSpec(
            num_scalar_prefetch=0, grid=grid,
            in_specs=in_specs, out_specs=out_spec,
            scratch_shapes=scratch_shapes),
        compiler_params=pltpu.CompilerParams(
            # "arbitrary": grid step 0 writes VMEM scratch that later steps read,
            # so the row axis must stay on one TensorCore for correctness.
            dimension_semantics=("arbitrary",),
            vmem_limit_bytes=vmem_limit),
        cost_estimate=pl.CostEstimate(
            flops=flops, transcendentals=0,
            bytes_accessed=x_pad.size * itemsize_c + param_bytes + out_bytes),
    )(*flat_inputs)

    # Flattened row ordering:  r = (((t_L*8 + t_{L-1})*8 + ...)*8 + t_1)*n_pad + nn,
    # t_l = kd_l*4 + kh_l*2 + kw_l.  Slice padding away FIRST, then one reshape +
    # ONE transpose gives NCDHW.
    c_out = c_outs[-1]
    side = 2 ** num_layers
    y = out3.reshape(8 * m_last, cps[-1])[:, :c_out]          # drop channel padding
    y = y.reshape((2,) * (3 * num_layers) + (n_pad, c_out))
    y = jax.lax.slice_in_dim(y, 0, n, axis=3 * num_layers)    # drop batch-row padding
    perm = [3 * num_layers, 3 * num_layers + 1]
    for comp in range(3):                                     # d, h, w (MSB first)
        perm += [3 * (num_layers - l) + comp for l in range(1, num_layers + 1)]
    y = jnp.transpose(y, perm)
    return y.reshape(n, c_out, side, side, side)


# ----------------------------------------------------------------------------
# Pure-JAX reference (NCDHW, per-layer) for correctness checking
# ----------------------------------------------------------------------------
def _ref_block(x, w, b):
    n, c_in, d, h, wd = x.shape
    c_out = w.shape[1]
    x2 = jnp.transpose(x, (0, 2, 3, 4, 1)).reshape(n * d * h * wd, c_in)
    w2 = w.reshape(c_in, c_out * 8)            # col = o*8 + kd*4 + kh*2 + kw
    y2 = jnp.maximum(x2 @ w2 + jnp.repeat(b, 8)[None, :], 0.0)
    y = y2.reshape(n, d, h, wd, c_out, 2, 2, 2)
    y = jnp.transpose(y, (0, 4, 1, 5, 2, 6, 3, 7))
    return y.reshape(n, c_out, 2 * d, 2 * h, 2 * wd)


def upsample_net_forward_ref(x, params):
    n, latent = x.shape
    out = x.reshape(n, latent, 1, 1, 1)
    for w, b in params:
        out = _ref_block(out, w, b)
    return out


def init_params(key, latent_dim, n_features):
    params = []
    in_feat = latent_dim
    for n_feat in n_features:
        key, kw, kb = jax.random.split(key, 3)
        # ConvTranspose3d weight layout: (in_channels, out_channels, kD, kH, kW)
        w = 0.05 * jax.random.normal(kw, (in_feat, n_feat, 2, 2, 2), jnp.float32)
        b = 0.05 * jax.random.normal(kb, (n_feat,), jnp.float32)
        params.append((w, b))
        in_feat = n_feat
    return params


if __name__ == "__main__":
    batch = 2
    latent_dim = 32
    n_features = [16, 8]

    key = jax.random.PRNGKey(0)
    key, kx = jax.random.split(key)
    x = jax.random.normal(kx, (batch, latent_dim), jnp.float32)
    params = init_params(key, latent_dim, n_features)

    ref = upsample_net_forward_ref(x, params)
    side = 2 ** len(n_features)
    expected_shape = (batch, n_features[-1], side, side, side)

    # f32 compute, auto row tile (single-step grid) -- bit-accurate vs. reference.
    fwd_f32 = jax.jit(functools.partial(upsample_net_forward_pallas,
                                        compute_dtype=jnp.float32))
    out_f32 = jax.block_until_ready(fwd_f32(x, params))
    assert out_f32.shape == expected_shape
    assert jnp.allclose(out_f32, ref, atol=1e-5, rtol=1e-5)

    # f32 compute, explicit small row tile -> multi-step grid (exercises the
    # row-tiled final layer + prologue-in-scratch path).
    fwd_f32_tiled = jax.jit(functools.partial(upsample_net_forward_pallas,
                                              compute_dtype=jnp.float32,
                                              row_tile=16))
    out_f32_t = jax.block_until_ready(fwd_f32_tiled(x, params))
    assert out_f32_t.shape == expected_shape
    assert jnp.allclose(out_f32_t, ref, atol=1e-5, rtol=1e-5)

    # bf16 MXU compute + bf16 resident activations + bf16 output (v6e/v7x config),
    # multi-step grid; accumulation stays f32.
    fwd_bf16 = jax.jit(functools.partial(upsample_net_forward_pallas,
                                         compute_dtype=jnp.bfloat16,
                                         out_dtype=jnp.bfloat16,
                                         row_tile=32))
    out_bf16 = jax.block_until_ready(fwd_bf16(x, params))
    assert out_bf16.shape == expected_shape
    assert out_bf16.dtype == jnp.bfloat16
    assert jnp.allclose(out_bf16.astype(jnp.float32), ref, atol=3e-2, rtol=3e-2)

    print("KERNEL_OK")
</pallas_src>

<mosaic_0001>
module attributes {stable_mosaic.version = 11 : i64} {
  func.func @kernel(%arg0: i32, %arg1: memref<8x128xf32, #tpu.memory_space<vmem>>, %arg2: memref<128x1024xf32, #tpu.memory_space<vmem>>, %arg3: memref<1x1024xf32, #tpu.memory_space<vmem>>, %arg4: memref<128x1024xf32, #tpu.memory_space<vmem>>, %arg5: memref<1x1024xf32, #tpu.memory_space<vmem>>, %arg6: memref<8x64x128xf32, #tpu.memory_space<vmem>>, %arg7: memref<64x128xf32, #tpu.memory_space<vmem>>) attributes {dimension_semantics = [#tpu.dimension_semantics<arbitrary>], iteration_bounds = array<i64: 1>, scalar_prefetch = 0 : i64, scratch_operands = 1 : i64, tpu.core_type = #tpu.core_type<tc>, window_params = [{pipeline_mode = #tpu.pipeline_mode<synchronous>, transform_indices = @transform_0, window_bounds = array<i64: 8, 128>}, {pipeline_mode = #tpu.pipeline_mode<synchronous>, transform_indices = @transform_1, window_bounds = array<i64: 128, 1024>}, {pipeline_mode = #tpu.pipeline_mode<synchronous>, transform_indices = @transform_2, window_bounds = array<i64: 1, 1024>}, {pipeline_mode = #tpu.pipeline_mode<synchronous>, transform_indices = @transform_3, window_bounds = array<i64: 128, 1024>}, {pipeline_mode = #tpu.pipeline_mode<synchronous>, transform_indices = @transform_4, window_bounds = array<i64: 1, 1024>}, {transform_indices = @transform_5, window_bounds = array<i64: 8, 64, 128>}]} {
    %c0_i32 = arith.constant 0 : i32
    %0 = arith.cmpi eq, %arg0, %c0_i32 : i32
    %1 = arith.extui %0 : i1 to i32
    %c0_i32_0 = arith.constant 0 : i32
    %2 = arith.cmpi ne, %1, %c0_i32_0 : i32
    scf.if %2 {
      %c0_58 = arith.constant 0 : index
      %c0_59 = arith.constant 0 : index
      %87 = vector.load %arg1[%c0_58, %c0_59] : memref<8x128xf32, #tpu.memory_space<vmem>>, vector<8x128xf32>
      %c0_60 = arith.constant 0 : index
      %c0_61 = arith.constant 0 : index
      %88 = vector.load %arg2[%c0_60, %c0_61] : memref<128x1024xf32, #tpu.memory_space<vmem>>, vector<128x128xf32>
      %cst_62 = arith.constant dense<0.000000e+00> : vector<8x128xf32>
      %89 = tpu.matmul %87, %88, %cst_62 {dimension_numbers = #tpu.dot_dimension_numbers<[1], [0], [0], [1], [0, 0, 1, 1], [], []>} : vector<8x128xf32>, vector<128x128xf32>, vector<8x128xf32> -> vector<8x128xf32>
      %c0_63 = arith.constant 0 : index
      %c0_64 = arith.constant 0 : index
      %90 = vector.load %arg3[%c0_63, %c0_64] : memref<1x1024xf32, #tpu.memory_space<vmem>>, vector<1x128xf32>
      %91 = vector.broadcast %90 : vector<1x128xf32> to vector<8x128xf32>
      %92 = arith.addf %89, %91 : vector<8x128xf32>
      %cst_65 = arith.constant 0.000000e+00 : f32
      %93 = vector.broadcast %cst_65 : f32 to vector<8x128xf32>
      %94 = arith.maximumf %92, %93 : vector<8x128xf32>
      %c0_66 = arith.constant 0 : index
      %c0_67 = arith.constant 0 : index
      %95 = vector.load %arg7[%c0_66, %c0_67] : memref<64x128xf32, #tpu.memory_space<vmem>>, vector<8x128xf32>
      tpu.vector_store %arg7[%c0_66, %c0_67], %94 {strides = array<i32>} : memref<64x128xf32, #tpu.memory_space<vmem>>, vector<8x128xf32>,
      %c0_68 = arith.constant 0 : index
      %c128_69 = arith.constant 128 : index
      %96 = vector.load %arg2[%c0_68, %c128_69] : memref<128x1024xf32, #tpu.memory_space<vmem>>, vector<128x128xf32>
      %cst_70 = arith.constant dense<0.000000e+00> : vector<8x128xf32>
      %97 = tpu.matmul %87, %96, %cst_70 {dimension_numbers = #tpu.dot_dimension_numbers<[1], [0], [0], [1], [0, 0, 1, 1], [], []>} : vector<8x128xf32>, vector<128x128xf32>, vector<8x128xf32> -> vector<8x128xf32>
      %c0_71 = arith.constant 0 : index
      %c128_72 = arith.constant 128 : index
      %98 = vector.load %arg3[%c0_71, %c128_72] : memref<1x1024xf32, #tpu.memory_space<vmem>>, vector<1x128xf32>
      %99 = vector.broadcast %98 : vector<1x128xf32> to vector<8x128xf32>
      %100 = arith.addf %97, %99 : vector<8x128xf32>
      %cst_73 = arith.constant 0.000000e+00 : f32
      %101 = vector.broadcast %cst_73 : f32 to vector<8x128xf32>
      %102 = arith.maximumf %100, %101 : vector<8x128xf32>
      %c8 = arith.constant 8 : index
      %c0_74 = arith.constant 0 : index
      %103 = vector.load %arg7[%c8, %c0_74] : memref<64x128xf32, #tpu.memory_space<vmem>>, vector<8x128xf32>
      tpu.vector_store %arg7[%c8, %c0_74], %102 {strides = array<i32>} : memref<64x128xf32, #tpu.memory_space<vmem>>, vector<8x128xf32>,
      %c0_75 = arith.constant 0 : index
      %c256_76 = arith.constant 256 : index
      %104 = vector.load %arg2[%c0_75, %c256_76] : memref<128x1024xf32, #tpu.memory_space<vmem>>, vector<128x128xf32>
      %cst_77 = arith.constant dense<0.000000e+00> : vector<8x128xf32>
      %105 = tpu.matmul %87, %104, %cst_77 {dimension_numbers = #tpu.dot_dimension_numbers<[1], [0], [0], [1], [0, 0, 1, 1], [], []>} : vector<8x128xf32>, vector<128x128xf32>, vector<8x128xf32> -> vector<8x128xf32>
      %c0_78 = arith.constant 0 : index
      %c256_79 = arith.constant 256 : index
      %106 = vector.load %arg3[%c0_78, %c256_79] : memref<1x1024xf32, #tpu.memory_space<vmem>>, vector<1x128xf32>
      %107 = vector.broadcast %106 : vector<1x128xf32> to vector<8x128xf32>
      %108 = arith.addf %105, %107 : vector<8x128xf32>
      %cst_80 = arith.constant 0.000000e+00 : f32
      %109 = vector.broadcast %cst_80 : f32 to vector<8x128xf32>
      %110 = arith.maximumf %108, %109 : vector<8x128xf32>
      %c16 = arith.constant 16 : index
      %c0_81 = arith.constant 0 : index
      %111 = vector.load %arg7[%c16, %c0_81] : memref<64x128xf32, #tpu.memory_space<vmem>>, vector<8x128xf32>
      tpu.vector_store %arg7[%c16, %c0_81], %110 {strides = array<i32>} : memref<64x128xf32, #tpu.memory_space<vmem>>, vector<8x128xf32>,
      %c0_82 = arith.constant 0 : index
      %c384_83 = arith.constant 384 : index
      %112 = vector.load %arg2[%c0_82, %c384_83] : memref<128x1024xf32, #tpu.memory_space<vmem>>, vector<128x128xf32>
      %cst_84 = arith.constant dense<0.000000e+00> : vector<8x128xf32>
      %113 = tpu.matmul %87, %112, %cst_84 {dimension_numbers = #tpu.dot_dimension_numbers<[1], [0], [0], [1], [0, 0, 1, 1], [], []>} : vector<8x128xf32>, vector<128x128xf32>, vector<8x128xf32> -> vector<8x128xf32>
      %c0_85 = arith.constant 0 : index
      %c384_86 = arith.constant 384 : index
      %114 = vector.load %arg3[%c0_85, %c384_86] : memref<1x1024xf32, #tpu.memory_space<vmem>>, vector<1x128xf32>
      %115 = vector.broadcast %114 : vector<1x128xf32> to vector<8x128xf32>
      %116 = arith.addf %113, %115 : vector<8x128xf32>
      %cst_87 = arith.constant 0.000000e+00 : f32
      %117 = vector.broadcast %cst_87 : f32 to vector<8x128xf32>
      %118 = arith.maximumf %116, %117 : vector<8x128xf32>
      %c24 = arith.constant 24 : index
      %c0_88 = arith.constant 0 : index
      %119 = vector.load %arg7[%c24, %c0_88] : memref<64x128xf32, #tpu.memory_space<vmem>>, vector<8x128xf32>
      tpu.vector_store %arg7[%c24, %c0_88], %118 {strides = array<i32>} : memref<64x128xf32, #tpu.memory_space<vmem>>, vector<8x128xf32>,
      %c0_89 = arith.constant 0 : index
      %c512_90 = arith.constant 512 : index
      %120 = vector.load %arg2[%c0_89, %c512_90] : memref<128x1024xf32, #tpu.memory_space<vmem>>, vector<128x128xf32>
      %cst_91 = arith.constant dense<0.000000e+00> : vector<8x128xf32>
      %121 = tpu.matmul %87, %120, %cst_91 {dimension_numbers = #tpu.dot_dimension_numbers<[1], [0], [0], [1], [0, 0, 1, 1], [], []>} : vector<8x128xf32>, vector<128x128xf32>, vector<8x128xf32> -> vector<8x128xf32>
      %c0_92 = arith.constant 0 : index
      %c512_93 = arith.constant 512 : index
      %122 = vector.load %arg3[%c0_92, %c512_93] : memref<1x1024xf32, #tpu.memory_space<vmem>>, vector<1x128xf32>
      %123 = vector.broadcast %122 : vector<1x128xf32> to vector<8x128xf32>
      %124 = arith.addf %121, %123 : vector<8x128xf32>
      %cst_94 = arith.constant 0.000000e+00 : f32
      %125 = vector.broadcast %cst_94 : f32 to vector<8x128xf32>
      %126 = arith.maximumf %124, %125 : vector<8x128xf32>
      %c32 = arith.constant 32 : index
      %c0_95 = arith.constant 0 : index
      %127 = vector.load %arg7[%c32, %c0_95] : memref<64x128xf32, #tpu.memory_space<vmem>>, vector<8x128xf32>
      tpu.vector_store %arg7[%c32, %c0_95], %126 {strides = array<i32>} : memref<64x128xf32, #tpu.memory_space<vmem>>, vector<8x128xf32>,
      %c0_96 = arith.constant 0 : index
      %c640_97 = arith.constant 640 : index
      %128 = vector.load %arg2[%c0_96, %c640_97] : memref<128x1024xf32, #tpu.memory_space<vmem>>, vector<128x128xf32>
      %cst_98 = arith.constant dense<0.000000e+00> : vector<8x128xf32>
      %129 = tpu.matmul %87, %128, %cst_98 {dimension_numbers = #tpu.dot_dimension_numbers<[1], [0], [0], [1], [0, 0, 1, 1], [], []>} : vector<8x128xf32>, vector<128x128xf32>, vector<8x128xf32> -> vector<8x128xf32>
      %c0_99 = arith.constant 0 : index
      %c640_100 = arith.constant 640 : index
      %130 = vector.load %arg3[%c0_99, %c640_100] : memref<1x1024xf32, #tpu.memory_space<vmem>>, vector<1x128xf32>
      %131 = vector.broadcast %130 : vector<1x128xf32> to vector<8x128xf32>
      %132 = arith.addf %129, %131 : vector<8x128xf32>
      %cst_101 = arith.constant 0.000000e+00 : f32
      %133 = vector.broadcast %cst_101 : f32 to vector<8x128xf32>
      %134 = arith.maximumf %132, %133 : vector<8x128xf32>
      %c40 = arith.constant 40 : index
      %c0_102 = arith.constant 0 : index
      %135 = vector.load %arg7[%c40, %c0_102] : memref<64x128xf32, #tpu.memory_space<vmem>>, vector<8x128xf32>
      tpu.vector_store %arg7[%c40, %c0_102], %134 {strides = array<i32>} : memref<64x128xf32, #tpu.memory_space<vmem>>, vector<8x128xf32>,
      %c0_103 = arith.constant 0 : index
      %c768_104 = arith.constant 768 : index
      %136 = vector.load %arg2[%c0_103, %c768_104] : memref<128x1024xf32, #tpu.memory_space<vmem>>, vector<128x128xf32>
      %cst_105 = arith.constant dense<0.000000e+00> : vector<8x128xf32>
      %137 = tpu.matmul %87, %136, %cst_105 {dimension_numbers = #tpu.dot_dimension_numbers<[1], [0], [0], [1], [0, 0, 1, 1], [], []>} : vector<8x128xf32>, vector<128x128xf32>, vector<8x128xf32> -> vector<8x128xf32>
      %c0_106 = arith.constant 0 : index
      %c768_107 = arith.constant 768 : index
      %138 = vector.load %arg3[%c0_106, %c768_107] : memref<1x1024xf32, #tpu.memory_space<vmem>>, vector<1x128xf32>
      %139 = vector.broadcast %138 : vector<1x128xf32> to vector<8x128xf32>
      %140 = arith.addf %137, %139 : vector<8x128xf32>
      %cst_108 = arith.constant 0.000000e+00 : f32
      %141 = vector.broadcast %cst_108 : f32 to vector<8x128xf32>
      %142 = arith.maximumf %140, %141 : vector<8x128xf32>
      %c48 = arith.constant 48 : index
      %c0_109 = arith.constant 0 : index
      %143 = vector.load %arg7[%c48, %c0_109] : memref<64x128xf32, #tpu.memory_space<vmem>>, vector<8x128xf32>
      tpu.vector_store %arg7[%c48, %c0_109], %142 {strides = array<i32>} : memref<64x128xf32, #tpu.memory_space<vmem>>, vector<8x128xf32>,
      %c0_110 = arith.constant 0 : index
      %c896_111 = arith.constant 896 : index
      %144 = vector.load %arg2[%c0_110, %c896_111] : memref<128x1024xf32, #tpu.memory_space<vmem>>, vector<128x128xf32>
      %cst_112 = arith.constant dense<0.000000e+00> : vector<8x128xf32>
      %145 = tpu.matmul %87, %144, %cst_112 {dimension_numbers = #tpu.dot_dimension_numbers<[1], [0], [0], [1], [0, 0, 1, 1], [], []>} : vector<8x128xf32>, vector<128x128xf32>, vector<8x128xf32> -> vector<8x128xf32>
      %c0_113 = arith.constant 0 : index
      %c896_114 = arith.constant 896 : index
      %146 = vector.load %arg3[%c0_113, %c896_114] : memref<1x1024xf32, #tpu.memory_space<vmem>>, vector<1x128xf32>
      %147 = vector.broadcast %146 : vector<1x128xf32> to vector<8x128xf32>
      %148 = arith.addf %145, %147 : vector<8x128xf32>
      %cst_115 = arith.constant 0.000000e+00 : f32
      %149 = vector.broadcast %cst_115 : f32 to vector<8x128xf32>
      %150 = arith.maximumf %148, %149 : vector<8x128xf32>
      %c56 = arith.constant 56 : index
      %c0_116 = arith.constant 0 : index
      %151 = vector.load %arg7[%c56, %c0_116] : memref<64x128xf32, #tpu.memory_space<vmem>>, vector<8x128xf32>
      tpu.vector_store %arg7[%c56, %c0_116], %150 {strides = array<i32>} : memref<64x128xf32, #tpu.memory_space<vmem>>, vector<8x128xf32>,
    } else {
    }
    %c64_i32 = arith.constant 64 : i32
    %3 = arith.muli %arg0, %c64_i32 : i32
    %4 = tpu.assume_multiple %3, 8 : i32
    %5 = arith.index_cast %4 : i32 to index
    %c0 = arith.constant 0 : index
    %6 = vector.load %arg7[%5, %c0] : memref<64x128xf32, #tpu.memory_space<vmem>>, vector<64x128xf32>
    %c0_1 = arith.constant 0 : index
    %c0_2 = arith.constant 0 : index
    %7 = vector.load %arg4[%c0_1, %c0_2] : memref<128x1024xf32, #tpu.memory_space<vmem>>, vector<128x128xf32>
    %cst = arith.constant dense<0.000000e+00> : vector<64x128xf32>
    %8 = tpu.matmul %6, %7, %cst {dimension_numbers = #tpu.dot_dimension_numbers<[1], [0], [0], [1], [0, 0, 1, 1], [], []>} : vector<64x128xf32>, vector<128x128xf32>, vector<64x128xf32> -> vector<64x128xf32>
    %c0_3 = arith.constant 0 : index
    %c0_4 = arith.constant 0 : index
    %9 = vector.load %arg5[%c0_3, %c0_4] : memref<1x1024xf32, #tpu.memory_space<vmem>>, vector<1x128xf32>
    %10 = vector.broadcast %9 : vector<1x128xf32> to vector<64x128xf32>
    %11 = arith.addf %8, %10 : vector<64x128xf32>
    %cst_5 = arith.constant 0.000000e+00 : f32
    %12 = vector.broadcast %cst_5 : f32 to vector<64x128xf32>
    %13 = arith.maximumf %11, %12 : vector<64x128xf32>
    %c0_6 = arith.constant 0 : index
    %c0_7 = arith.constant 0 : index
    %c0_8 = arith.constant 0 : index
    %14 = vector.load %arg6[%c0_6, %c0_7, %c0_8] : memref<8x64x128xf32, #tpu.memory_space<vmem>>, vector<1x64x128xf32>
    %15 = vector.shape_cast %14 : vector<1x64x128xf32> to vector<64x128xf32>
    %16 = vector.shape_cast %13 : vector<64x128xf32> to vector<1x64x128xf32>
    tpu.vector_store %arg6[%c0_6, %c0_7, %c0_8], %16 {strides = array<i32>} : memref<8x64x128xf32, #tpu.memory_space<vmem>>, vector<1x64x128xf32>,
    %c0_9 = arith.constant 0 : index
    %c128 = arith.constant 128 : index
    %17 = vector.load %arg4[%c0_9, %c128] : memref<128x1024xf32, #tpu.memory_space<vmem>>, vector<128x128xf32>
    %cst_10 = arith.constant dense<0.000000e+00> : vector<64x128xf32>
    %18 = tpu.matmul %6, %17, %cst_10 {dimension_numbers = #tpu.dot_dimension_numbers<[1], [0], [0], [1], [0, 0, 1, 1], [], []>} : vector<64x128xf32>, vector<128x128xf32>, vector<64x128xf32> -> vector<64x128xf32>
    %c0_11 = arith.constant 0 : index
    %c128_12 = arith.constant 128 : index
    %19 = vector.load %arg5[%c0_11, %c128_12] : memref<1x1024xf32, #tpu.memory_space<vmem>>, vector<1x128xf32>
    %20 = vector.broadcast %19 : vector<1x128xf32> to vector<64x128xf32>
    %21 = arith.addf %18, %20 : vector<64x128xf32>
    %cst_13 = arith.constant 0.000000e+00 : f32
    %22 = vector.broadcast %cst_13 : f32 to vector<64x128xf32>
    %23 = arith.maximumf %21, %22 : vector<64x128xf32>
    %c1 = arith.constant 1 : index
    %c0_14 = arith.constant 0 : index
    %c0_15 = arith.constant 0 : index
    %24 = vector.load %arg6[%c1, %c0_14, %c0_15] : memref<8x64x128xf32, #tpu.memory_space<vmem>>, vector<1x64x128xf32>
    %25 = vector.shape_cast %24 : vector<1x64x128xf32> to vector<64x128xf32>
    %26 = vector.shape_cast %23 : vector<64x128xf32> to vector<1x64x128xf32>
    tpu.vector_store %arg6[%c1, %c0_14, %c0_15], %26 {strides = array<i32>} : memref<8x64x128xf32, #tpu.memory_space<vmem>>, vector<1x64x128xf32>,
    %c0_16 = arith.constant 0 : index
    %c256 = arith.constant 256 : index
    %27 = vector.load %arg4[%c0_16, %c256] : memref<128x1024xf32, #tpu.memory_space<vmem>>, vector<128x128xf32>
    %cst_17 = arith.constant dense<0.000000e+00> : vector<64x128xf32>
    %28 = tpu.matmul %6, %27, %cst_17 {dimension_numbers = #tpu.dot_dimension_numbers<[1], [0], [0], [1], [0, 0, 1, 1], [], []>} : vector<64x128xf32>, vector<128x128xf32>, vector<64x128xf32> -> vector<64x128xf32>
    %c0_18 = arith.constant 0 : index
    %c256_19 = arith.constant 256 : index
    %29 = vector.load %arg5[%c0_18, %c256_19] : memref<1x1024xf32, #tpu.memory_space<vmem>>, vector<1x128xf32>
    %30 = vector.broadcast %29 : vector<1x128xf32> to vector<64x128xf32>
    %31 = arith.addf %28, %30 : vector<64x128xf32>
    %cst_20 = arith.constant 0.000000e+00 : f32
    %32 = vector.broadcast %cst_20 : f32 to vector<64x128xf32>
    %33 = arith.maximumf %31, %32 : vector<64x128xf32>
    %c2 = arith.constant 2 : index
    %c0_21 = arith.constant 0 : index
    %c0_22 = arith.constant 0 : index
    %34 = vector.load %arg6[%c2, %c0_21, %c0_22] : memref<8x64x128xf32, #tpu.memory_space<vmem>>, vector<1x64x128xf32>
    %35 = vector.shape_cast %34 : vector<1x64x128xf32> to vector<64x128xf32>
    %36 = vector.shape_cast %33 : vector<64x128xf32> to vector<1x64x128xf32>
    tpu.vector_store %arg6[%c2, %c0_21, %c0_22], %36 {strides = array<i32>} : memref<8x64x128xf32, #tpu.memory_space<vmem>>, vector<1x64x128xf32>,
    %c0_23 = arith.constant 0 : index
    %c384 = arith.constant 384 : index
    %37 = vector.load %arg4[%c0_23, %c384] : memref<128x1024xf32, #tpu.memory_space<vmem>>, vector<128x128xf32>
    %cst_24 = arith.constant dense<0.000000e+00> : vector<64x128xf32>
    %38 = tpu.matmul %6, %37, %cst_24 {dimension_numbers = #tpu.dot_dimension_numbers<[1], [0], [0], [1], [0, 0, 1, 1], [], []>} : vector<64x128xf32>, vector<128x128xf32>, vector<64x128xf32> -> vector<64x128xf32>
    %c0_25 = arith.constant 0 : index
    %c384_26 = arith.constant 384 : index
    %39 = vector.load %arg5[%c0_25, %c384_26] : memref<1x1024xf32, #tpu.memory_space<vmem>>, vector<1x128xf32>
    %40 = vector.broadcast %39 : vector<1x128xf32> to vector<64x128xf32>
    %41 = arith.addf %38, %40 : vector<64x128xf32>
    %cst_27 = arith.constant 0.000000e+00 : f32
    %42 = vector.broadcast %cst_27 : f32 to vector<64x128xf32>
    %43 = arith.maximumf %41, %42 : vector<64x128xf32>
    %c3 = arith.constant 3 : index
    %c0_28 = arith.constant 0 : index
    %c0_29 = arith.constant 0 : index
    %44 = vector.load %arg6[%c3, %c0_28, %c0_29] : memref<8x64x128xf32, #tpu.memory_space<vmem>>, vector<1x64x128xf32>
    %45 = vector.shape_cast %44 : vector<1x64x128xf32> to vector<64x128xf32>
    %46 = vector.shape_cast %43 : vector<64x128xf32> to vector<1x64x128xf32>
    tpu.vector_store %arg6[%c3, %c0_28, %c0_29], %46 {strides = array<i32>} : memref<8x64x128xf32, #tpu.memory_space<vmem>>, vector<1x64x128xf32>,
    %c0_30 = arith.constant 0 : index
    %c512 = arith.constant 512 : index
    %47 = vector.load %arg4[%c0_30, %c512] : memref<128x1024xf32, #tpu.memory_space<vmem>>, vector<128x128xf32>
    %cst_31 = arith.constant dense<0.000000e+00> : vector<64x128xf32>
    %48 = tpu.matmul %6, %47, %cst_31 {dimension_numbers = #tpu.dot_dimension_numbers<[1], [0], [0], [1], [0, 0, 1, 1], [], []>} : vector<64x128xf32>, vector<128x128xf32>, vector<64x128xf32> -> vector<64x128xf32>
    %c0_32 = arith.constant 0 : index
    %c512_33 = arith.constant 512 : index
    %49 = vector.load %arg5[%c0_32, %c512_33] : memref<1x1024xf32, #tpu.memory_space<vmem>>, vector<1x128xf32>
    %50 = vector.broadcast %49 : vector<1x128xf32> to vector<64x128xf32>
    %51 = arith.addf %48, %50 : vector<64x128xf32>
    %cst_34 = arith.constant 0.000000e+00 : f32
    %52 = vector.broadcast %cst_34 : f32 to vector<64x128xf32>
    %53 = arith.maximumf %51, %52 : vector<64x128xf32>
    %c4 = arith.constant 4 : index
    %c0_35 = arith.constant 0 : index
    %c0_36 = arith.constant 0 : index
    %54 = vector.load %arg6[%c4, %c0_35, %c0_36] : memref<8x64x128xf32, #tpu.memory_space<vmem>>, vector<1x64x128xf32>
    %55 = vector.shape_cast %54 : vector<1x64x128xf32> to vector<64x128xf32>
    %56 = vector.shape_cast %53 : vector<64x128xf32> to vector<1x64x128xf32>
    tpu.vector_store %arg6[%c4, %c0_35, %c0_36], %56 {strides = array<i32>} : memref<8x64x128xf32, #tpu.memory_space<vmem>>, vector<1x64x128xf32>,
    %c0_37 = arith.constant 0 : index
    %c640 = arith.constant 640 : index
    %57 = vector.load %arg4[%c0_37, %c640] : memref<128x1024xf32, #tpu.memory_space<vmem>>, vector<128x128xf32>
    %cst_38 = arith.constant dense<0.000000e+00> : vector<64x128xf32>
    %58 = tpu.matmul %6, %57, %cst_38 {dimension_numbers = #tpu.dot_dimension_numbers<[1], [0], [0], [1], [0, 0, 1, 1], [], []>} : vector<64x128xf32>, vector<128x128xf32>, vector<64x128xf32> -> vector<64x128xf32>
    %c0_39 = arith.constant 0 : index
    %c640_40 = arith.constant 640 : index
    %59 = vector.load %arg5[%c0_39, %c640_40] : memref<1x1024xf32, #tpu.memory_space<vmem>>, vector<1x128xf32>
    %60 = vector.broadcast %59 : vector<1x128xf32> to vector<64x128xf32>
    %61 = arith.addf %58, %60 : vector<64x128xf32>
    %cst_41 = arith.constant 0.000000e+00 : f32
    %62 = vector.broadcast %cst_41 : f32 to vector<64x128xf32>
    %63 = arith.maximumf %61, %62 : vector<64x128xf32>
    %c5 = arith.constant 5 : index
    %c0_42 = arith.constant 0 : index
    %c0_43 = arith.constant 0 : index
    %64 = vector.load %arg6[%c5, %c0_42, %c0_43] : memref<8x64x128xf32, #tpu.memory_space<vmem>>, vector<1x64x128xf32>
    %65 = vector.shape_cast %64 : vector<1x64x128xf32> to vector<64x128xf32>
    %66 = vector.shape_cast %63 : vector<64x128xf32> to vector<1x64x128xf32>
    tpu.vector_store %arg6[%c5, %c0_42, %c0_43], %66 {strides = array<i32>} : memref<8x64x128xf32, #tpu.memory_space<vmem>>, vector<1x64x128xf32>,
    %c0_44 = arith.constant 0 : index
    %c768 = arith.constant 768 : index
    %67 = vector.load %arg4[%c0_44, %c768] : memref<128x1024xf32, #tpu.memory_space<vmem>>, vector<128x128xf32>
    %cst_45 = arith.constant dense<0.000000e+00> : vector<64x128xf32>
    %68 = tpu.matmul %6, %67, %cst_45 {dimension_numbers = #tpu.dot_dimension_numbers<[1], [0], [0], [1], [0, 0, 1, 1], [], []>} : vector<64x128xf32>, vector<128x128xf32>, vector<64x128xf32> -> vector<64x128xf32>
    %c0_46 = arith.constant 0 : index
    %c768_47 = arith.constant 768 : index
    %69 = vector.load %arg5[%c0_46, %c768_47] : memref<1x1024xf32, #tpu.memory_space<vmem>>, vector<1x128xf32>
    %70 = vector.broadcast %69 : vector<1x128xf32> to vector<64x128xf32>
    %71 = arith.addf %68, %70 : vector<64x128xf32>
    %cst_48 = arith.constant 0.000000e+00 : f32
    %72 = vector.broadcast %cst_48 : f32 to vector<64x128xf32>
    %73 = arith.maximumf %71, %72 : vector<64x128xf32>
    %c6 = arith.constant 6 : index
    %c0_49 = arith.constant 0 : index
    %c0_50 = arith.constant 0 : index
    %74 = vector.load %arg6[%c6, %c0_49, %c0_50] : memref<8x64x128xf32, #tpu.memory_space<vmem>>, vector<1x64x128xf32>
    %75 = vector.shape_cast %74 : vector<1x64x128xf32> to vector<64x128xf32>
    %76 = vector.shape_cast %73 : vector<64x128xf32> to vector<1x64x128xf32>
    tpu.vector_store %arg6[%c6, %c0_49, %c0_50], %76 {strides = array<i32>} : memref<8x64x128xf32, #tpu.memory_space<vmem>>, vector<1x64x128xf32>,
    %c0_51 = arith.constant 0 : index
    %c896 = arith.constant 896 : index
    %77 = vector.load %arg4[%c0_51, %c896] : memref<128x1024xf32, #tpu.memory_space<vmem>>, vector<128x128xf32>
    %cst_52 = arith.constant dense<0.000000e+00> : vector<64x128xf32>
    %78 = tpu.matmul %6, %77, %cst_52 {dimension_numbers = #tpu.dot_dimension_numbers<[1], [0], [0], [1], [0, 0, 1, 1], [], []>} : vector<64x128xf32>, vector<128x128xf32>, vector<64x128xf32> -> vector<64x128xf32>
    %c0_53 = arith.constant 0 : index
    %c896_54 = arith.constant 896 : index
    %79 = vector.load %arg5[%c0_53, %c896_54] : memref<1x1024xf32, #tpu.memory_space<vmem>>, vector<1x128xf32>
    %80 = vector.broadcast %79 : vector<1x128xf32> to vector<64x128xf32>
    %81 = arith.addf %78, %80 : vector<64x128xf32>
    %cst_55 = arith.constant 0.000000e+00 : f32
    %82 = vector.broadcast %cst_55 : f32 to vector<64x128xf32>
    %83 = arith.maximumf %81, %82 : vector<64x128xf32>
    %c7 = arith.constant 7 : index
    %c0_56 = arith.constant 0 : index
    %c0_57 = arith.constant 0 : index
    %84 = vector.load %arg6[%c7, %c0_56, %c0_57] : memref<8x64x128xf32, #tpu.memory_space<vmem>>, vector<1x64x128xf32>
    %85 = vector.shape_cast %84 : vector<1x64x128xf32> to vector<64x128xf32>
    %86 = vector.shape_cast %83 : vector<64x128xf32> to vector<1x64x128xf32>
    tpu.vector_store %arg6[%c7, %c0_56, %c0_57], %86 {strides = array<i32>} : memref<8x64x128xf32, #tpu.memory_space<vmem>>, vector<1x64x128xf32>,
    return
  }
  func.func @transform_0(%arg0: i32) -> (i32, i32) {
    %c0_i32 = arith.constant 0 : i32
    %c0_i32_0 = arith.constant 0 : i32
    %c0_i32_1 = arith.constant 0 : i32
    return %c0_i32, %c0_i32_0 : i32, i32
  }
  func.func @transform_1(%arg0: i32) -> (i32, i32) {
    %c0_i32 = arith.constant 0 : i32
    %c0_i32_0 = arith.constant 0 : i32
    %c0_i32_1 = arith.constant 0 : i32
    return %c0_i32, %c0_i32_0 : i32, i32
  }
  func.func @transform_2(%arg0: i32) -> (i32, i32) {
    %c0_i32 = arith.constant 0 : i32
    %c0_i32_0 = arith.constant 0 : i32
    %c0_i32_1 = arith.constant 0 : i32
    return %c0_i32, %c0_i32_0 : i32, i32
  }
  func.func @transform_3(%arg0: i32) -> (i32, i32) {
    %c0_i32 = arith.constant 0 : i32
    %c0_i32_0 = arith.constant 0 : i32
    %c0_i32_1 = arith.constant 0 : i32
    return %c0_i32, %c0_i32_0 : i32, i32
  }
  func.func @transform_4(%arg0: i32) -> (i32, i32) {
    %c0_i32 = arith.constant 0 : i32
    %c0_i32_0 = arith.constant 0 : i32
    %c0_i32_1 = arith.constant 0 : i32
    return %c0_i32, %c0_i32_0 : i32, i32
  }
  func.func @transform_5(%arg0: i32) -> (i32, i32, i32) {
    %c0_i32 = arith.constant 0 : i32
    %c0_i32_0 = arith.constant 0 : i32
    %c0_i32_1 = arith.constant 0 : i32
    return %c0_i32, %arg0, %c0_i32_0 : i32, i32, i32
  }
}

</mosaic_0001>

<bundles_post_ra>
// kernel: tile.13
= control target key start
LH: loop header
LB: loop body
LE: loop exit
PB: predicated region body
PF: predicated region fallthrough
CT: control target
= control target key end

     0   :  { %s22_s0 = inlined_call_operand.vmem [shape: f32[128], index: 0, kind: input, shape index: {}]   ;;  %s23_s1 = inlined_call_operand.vmem [shape: f32[8,128], index: 1, kind: output, shape index: {}]  }
   0x1   :  { %v4_v0 = vld [vmem:[%s22_s0] ss:$0 sm:$0xff] }
   0x2   :  { %5 = vst [vmem:[%s23_s1] sm:$0xff] %v4_v0 }

// kernel: upsample_net_forward_pallas.1
= control target key start
LH: loop header
LB: loop body
LE: loop exit
PB: predicated region body
PF: predicated region fallthrough
CT: control target
= control target key end

     0   :  { %s2241_s1 = inlined_call_operand.vmem [shape: f32[128,1024], index: 1, kind: input, shape index: {}]   ;;  %s2242_s0 = inlined_call_operand.vmem [shape: f32[8,128], index: 0, kind: input, shape index: {}]   ;;  %s2243_s2 = inlined_call_operand.vmem [shape: f32[1,1024], index: 2, kind: input, shape index: {}]   ;;  %s2244_s3 = inlined_call_operand.vmem [shape: f32[128,1024], index: 3, kind: input, shape index: {}]   ;;  %s2245_s4 = inlined_call_operand.vmem [shape: f32[1,1024], index: 4, kind: input, shape index: {}]   ;;  %s2246_s5 = inlined_call_operand.vmem [shape: f32[8,64,128], index: 5, kind: output, shape index: {}]  }
   0x1   :  { %v40_v0 = vld [vmem:[%s2241_s1 + $0x3c0] sm:$0xff]  ;;  %v82_v2 = vld [vmem:[%s2241_s1 + $0x3c8] sm:$0xff]  ;;  %v124_v5 = vld [vmem:[%s2241_s1 + $0x3d0] sm:$0xff] }
   0x2   :  { %v39_v1 = vld [vmem:[%s2241_s1 + $0x380] sm:$0xff]  ;;  %45 = vmatpush.msra.mxu0 %v40_v0  ;;  %87 = vmatpush.msra.mxu1 %v82_v2  ;;  %v81_v4 = vld [vmem:[%s2241_s1 + $0x388] sm:$0xff]  ;;  %v123_v7 = vld [vmem:[%s2241_s1 + $0x390] sm:$0xff] }
   0x3   :  { %v38_v3 = vld [vmem:[%s2241_s1 + $0x340] sm:$0xff]  ;;  %129 = vmatpush.msra.mxu2 %v124_v5  ;;  %v80_v6 = vld [vmem:[%s2241_s1 + $0x348] sm:$0xff]  ;;  %v122_v9 = vld [vmem:[%s2241_s1 + $0x350] sm:$0xff] }
   0x4   :  { %46 = vmatpush.msra.mxu0 %v39_v1  ;;  %v37_v8 = vld [vmem:[%s2241_s1 + $0x300] sm:$0xff]  ;;  %88 = vmatpush.msra.mxu1 %v81_v4  ;;  %v79_v10 = vld [vmem:[%s2241_s1 + $0x308] sm:$0xff]  ;;  %v121_v12 = vld [vmem:[%s2241_s1 + $0x310] sm:$0xff] }
   0x5   :  { %130 = vmatpush.msra.mxu2 %v123_v7  ;;  %v36_v11 = vld [vmem:[%s2241_s1 + $0x2c0] sm:$0xff]  ;;  %v78_v13 = vld [vmem:[%s2241_s1 + $0x2c8] sm:$0xff]  ;;  %v166_v14 = vld [vmem:[%s2241_s1 + $0x3d8] sm:$0xff] }
   0x6   :  { %47 = vmatpush.msra.mxu0 %v38_v3  ;;  %89 = vmatpush.msra.mxu1 %v80_v6  ;;  %v35_v15 = vld [vmem:[%s2241_s1 + $0x280] sm:$0xff]  ;;  %v120_v16 = vld [vmem:[%s2241_s1 + $0x2d0] sm:$0xff]  ;;  %v165_v17 = vld [vmem:[%s2241_s1 + $0x398] sm:$0xff] }
   0x7   :  { %131 = vmatpush.msra.mxu2 %v122_v9  ;;  %171 = vmatpush.msra.mxu3 %v166_v14  ;;  %v77_v18 = vld [vmem:[%s2241_s1 + $0x288] sm:$0xff]  ;;  %v164_v19 = vld [vmem:[%s2241_s1 + $0x358] sm:$0xff]  ;;  %v34_v20 = vld [vmem:[%s2241_s1 + $0x240] sm:$0xff] }
   0x8   :  { %48 = vmatpush.msra.mxu0 %v37_v8  ;;  %90 = vmatpush.msra.mxu1 %v79_v10  ;;  %v119_v21 = vld [vmem:[%s2241_s1 + $0x290] sm:$0xff]  ;;  %v76_v22 = vld [vmem:[%s2241_s1 + $0x248] sm:$0xff]  ;;  %v163_v23 = vld [vmem:[%s2241_s1 + $0x318] sm:$0xff] }
   0x9   :  { %132 = vmatpush.msra.mxu2 %v121_v12  ;;  %172 = vmatpush.msra.mxu3 %v165_v17  ;;  %v33_v24 = vld [vmem:[%s2241_s1 + $0x200] sm:$0xff]  ;;  %v118_v25 = vld [vmem:[%s2241_s1 + $0x250] sm:$0xff]  ;;  %v75_v26 = vld [vmem:[%s2241_s1 + $0x208] sm:$0xff] }
   0xa   :  { %49 = vmatpush.msra.mxu0 %v36_v11  ;;  %91 = vmatpush.msra.mxu1 %v78_v13  ;;  %v162_v27 = vld [vmem:[%s2241_s1 + $0x2d8] sm:$0xff]  ;;  %v32_v28 = vld [vmem:[%s2241_s1 + $0x1c0] sm:$0xff]  ;;  %v117_v29 = vld [vmem:[%s2241_s1 + $0x210] sm:$0xff] }
   0xb   :  { %133 = vmatpush.msra.mxu2 %v120_v16  ;;  %173 = vmatpush.msra.mxu3 %v164_v19  ;;  %v74_v30 = vld [vmem:[%s2241_s1 + $0x1c8] sm:$0xff]  ;;  %v161_v31 = vld [vmem:[%s2241_s1 + $0x298] sm:$0xff]  ;;  %v31_v32 = vld [vmem:[%s2241_s1 + $0x180] sm:$0xff] }
   0xc   :  { %50 = vmatpush.msra.mxu0 %v35_v15  ;;  %92 = vmatpush.msra.mxu1 %v77_v18  ;;  %v116_v33 = vld [vmem:[%s2241_s1 + $0x1d0] sm:$0xff]  ;;  %v73_v34 = vld [vmem:[%s2241_s1 + $0x188] sm:$0xff]  ;;  %v160_v35 = vld [vmem:[%s2241_s1 + $0x258] sm:$0xff] }
   0xd   :  { %134 = vmatpush.msra.mxu2 %v119_v21  ;;  %174 = vmatpush.msra.mxu3 %v163_v23  ;;  %v30_v36 = vld [vmem:[%s2241_s1 + $0x140] sm:$0xff]  ;;  %v115_v37 = vld [vmem:[%s2241_s1 + $0x190] sm:$0xff]  ;;  %v72_v38 = vld [vmem:[%s2241_s1 + $0x148] sm:$0xff] }
   0xe   :  { %51 = vmatpush.msra.mxu0 %v34_v20  ;;  %93 = vmatpush.msra.mxu1 %v76_v22  ;;  %v159_v39 = vld [vmem:[%s2241_s1 + $0x218] sm:$0xff]  ;;  %v29_v40 = vld [vmem:[%s2241_s1 + $0x100] sm:$0xff]  ;;  %v114_v41 = vld [vmem:[%s2241_s1 + $0x150] sm:$0xff] }
   0xf   :  { %135 = vmatpush.msra.mxu2 %v118_v25  ;;  %175 = vmatpush.msra.mxu3 %v162_v27  ;;  %v71_v42 = vld [vmem:[%s2241_s1 + $0x108] sm:$0xff]  ;;  %v158_v43 = vld [vmem:[%s2241_s1 + $0x1d8] sm:$0xff]  ;;  %v28_v44 = vld [vmem:[%s2241_s1 + $0xc0] sm:$0xff] }
  0x10   :  { %52 = vmatpush.msra.mxu0 %v33_v24  ;;  %94 = vmatpush.msra.mxu1 %v75_v26  ;;  %v113_v45 = vld [vmem:[%s2241_s1 + $0x110] sm:$0xff]  ;;  %v70_v46 = vld [vmem:[%s2241_s1 + $0xc8] sm:$0xff]  ;;  %v157_v47 = vld [vmem:[%s2241_s1 + $0x198] sm:$0xff] }
  0x11   :  { %136 = vmatpush.msra.mxu2 %v117_v29  ;;  %176 = vmatpush.msra.mxu3 %v161_v31  ;;  %v27_v48 = vld [vmem:[%s2241_s1 + $0x80] sm:$0xff]  ;;  %v112_v49 = vld [vmem:[%s2241_s1 + $0xd0] sm:$0xff]  ;;  %v69_v50 = vld [vmem:[%s2241_s1 + $0x88] sm:$0xff] }
  0x12   :  { %53 = vmatpush.msra.mxu0 %v32_v28  ;;  %95 = vmatpush.msra.mxu1 %v74_v30  ;;  %v156_v51 = vld [vmem:[%s2241_s1 + $0x158] sm:$0xff]  ;;  %v26_v52 = vld [vmem:[%s2241_s1 + $0x40] sm:$0xff]  ;;  %v111_v53 = vld [vmem:[%s2241_s1 + $0x90] sm:$0xff] }
  0x13   :  { %137 = vmatpush.msra.mxu2 %v116_v33  ;;  %177 = vmatpush.msra.mxu3 %v160_v35  ;;  %v68_v54 = vld [vmem:[%s2241_s1 + $0x48] sm:$0xff]  ;;  %v155_v55 = vld [vmem:[%s2241_s1 + $0x118] sm:$0xff]  ;;  %v25_v56 = vld [vmem:[%s2241_s1] sm:$0xff] }
  0x14   :  { %54 = vmatpush.msra.mxu0 %v31_v32  ;;  %96 = vmatpush.msra.mxu1 %v73_v34  ;;  %v110_v57 = vld [vmem:[%s2241_s1 + $0x50] sm:$0xff]  ;;  %v1277_v58 = vld [vmem:[%s2242_s0] sm:$0xff]  ;;  %v67_v59 = vld [vmem:[%s2241_s1 + $0x8] sm:$0xff] }
  0x15   :  { %138 = vmatpush.msra.mxu2 %v115_v37  ;;  %178 = vmatpush.msra.mxu3 %v159_v39  ;;  %v208_v60 = vld [vmem:[%s2241_s1 + $0x3e0] sm:$0xff]  ;;  %v109_v61 = vld [vmem:[%s2241_s1 + $0x10] sm:$0xff]  ;;  %v250_v62 = vld [vmem:[%s2241_s1 + $0x3e8] sm:$0xff] }
  0x16   :  { %55 = vmatpush.msra.mxu0 %v30_v36  ;;  %97 = vmatpush.msra.mxu1 %v72_v38  ;;  %v207_v63 = vld [vmem:[%s2241_s1 + $0x3a0] sm:$0xff]  ;;  %v154_v0 = vld [vmem:[%s2241_s1 + $0xd8] sm:$0xff]  ;;  %v249_v1 = vld [vmem:[%s2241_s1 + $0x3a8] sm:$0xff] }
  0x17   :  { %139 = vmatpush.msra.mxu2 %v114_v41  ;;  %179 = vmatpush.msra.mxu3 %v158_v43  ;;  %v206_v2 = vld [vmem:[%s2241_s1 + $0x360] sm:$0xff]  ;;  %v292_v3 = vld [vmem:[%s2241_s1 + $0x3f0] sm:$0xff]  ;;  %v153_v4 = vld [vmem:[%s2241_s1 + $0x98] sm:$0xff] }
  0x18   :  { %56 = vmatpush.msra.mxu0 %v29_v40  ;;  %98 = vmatpush.msra.mxu1 %v71_v42  ;;  %v248_v5 = vld [vmem:[%s2241_s1 + $0x368] sm:$0xff]  ;;  %v205_v6 = vld [vmem:[%s2241_s1 + $0x320] sm:$0xff]  ;;  %v291_v7 = vld [vmem:[%s2241_s1 + $0x3b0] sm:$0xff] }
  0x19   :  { %140 = vmatpush.msra.mxu2 %v113_v45  ;;  %180 = vmatpush.msra.mxu3 %v157_v47  ;;  %v152_v8 = vld [vmem:[%s2241_s1 + $0x58] sm:$0xff]  ;;  %v247_v9 = vld [vmem:[%s2241_s1 + $0x328] sm:$0xff]  ;;  %v204_v10 = vld [vmem:[%s2241_s1 + $0x2e0] sm:$0xff] }
  0x1a   :  { %57 = vmatpush.msra.mxu0 %v28_v44  ;;  %99 = vmatpush.msra.mxu1 %v70_v46  ;;  %v290_v11 = vld [vmem:[%s2241_s1 + $0x370] sm:$0xff]  ;;  %v151_v12 = vld [vmem:[%s2241_s1 + $0x18] sm:$0xff]  ;;  %v246_v13 = vld [vmem:[%s2241_s1 + $0x2e8] sm:$0xff] }
  0x1b   :  { %141 = vmatpush.msra.mxu2 %v112_v49  ;;  %181 = vmatpush.msra.mxu3 %v156_v51  ;;  %v203_v14 = vld [vmem:[%s2241_s1 + $0x2a0] sm:$0xff]  ;;  %v289_v15 = vld [vmem:[%s2241_s1 + $0x330] sm:$0xff]  ;;  %v245_v17 = vld [vmem:[%s2241_s1 + $0x2a8] sm:$0xff] }
  0x1c   :  { %58 = vmatpush.msra.mxu0 %v27_v48  ;;  %100 = vmatpush.msra.mxu1 %v69_v50  ;;  %v202_v16 = vld [vmem:[%s2241_s1 + $0x260] sm:$0xff]  ;;  %v288_v18 = vld [vmem:[%s2241_s1 + $0x2f0] sm:$0xff]  ;;  %v334_v20 = vld [vmem:[%s2241_s1 + $0x3f8] sm:$0xff] }
  0x1d   :  { %142 = vmatpush.msra.mxu2 %v111_v53  ;;  %182 = vmatpush.msra.mxu3 %v155_v55  ;;  %v201_v19 = vld [vmem:[%s2241_s1 + $0x220] sm:$0xff]  ;;  %v244_v21 = vld [vmem:[%s2241_s1 + $0x268] sm:$0xff]  ;;  %v287_v22 = vld [vmem:[%s2241_s1 + $0x2b0] sm:$0xff] }
  0x1e   :  { %59 = vmatpush.msra.mxu0 %v26_v52  ;;  %101 = vmatpush.msra.mxu1 %v68_v54  ;;  %v333_v23 = vld [vmem:[%s2241_s1 + $0x3b8] sm:$0xff]  ;;  %v243_v24 = vld [vmem:[%s2241_s1 + $0x228] sm:$0xff]  ;;  %v200_v25 = vld [vmem:[%s2241_s1 + $0x1e0] sm:$0xff] }
  0x1f   :  { %143 = vmatpush.msra.mxu2 %v110_v57  ;;  %183 = vmatpush.msra.mxu3 %v154_v0  ;;  %v286_v26 = vld [vmem:[%s2241_s1 + $0x270] sm:$0xff]  ;;  %v332_v27 = vld [vmem:[%s2241_s1 + $0x378] sm:$0xff]  ;;  %v242_v28 = vld [vmem:[%s2241_s1 + $0x1e8] sm:$0xff] }
  0x20   :  { %60 = vmatpush.msra.mxu0 %v25_v56  ;;  %102 = vmatpush.msra.mxu1 %v67_v59  ;;  %v199_v29 = vld [vmem:[%s2241_s1 + $0x1a0] sm:$0xff]  ;;  %v285_v30 = vld [vmem:[%s2241_s1 + $0x230] sm:$0xff]  ;;  %v331_v31 = vld [vmem:[%s2241_s1 + $0x338] sm:$0xff] }
  0x21   :  { %61 = vmatmul.f32.vlgmr.msra.gmra.mxu0 %v1277_v58  ;;  %103 = vmatmul.f32.vlgmr.msra.gmra.mxu1 %v1277_v58  ;;  %v241_v32 = vld [vmem:[%s2241_s1 + $0x1a8] sm:$0xff]  ;;  %v198_v33 = vld [vmem:[%s2241_s1 + $0x160] sm:$0xff]  ;;  %v284_v34 = vld [vmem:[%s2241_s1 + $0x1f0] sm:$0xff] }
  0x22   :  { %213 = vmatpush.msrb.mxu0 %v208_v60  ;;  %144 = vmatpush.msra.mxu2 %v109_v61  ;;  %v330_v35 = vld [vmem:[%s2241_s1 + $0x2f8] sm:$0xff]  ;;  %v240_v36 = vld [vmem:[%s2241_s1 + $0x168] sm:$0xff]  ;;  %v197_v37 = vld [vmem:[%s2241_s1 + $0x120] sm:$0xff] }
  0x23   :  { %255 = vmatpush.msrb.mxu1 %v250_v62  ;;  %145 = vmatmul.f32.vlgmr.msra.gmra.mxu2 %v1277_v58  ;;  %v283_v38 = vld [vmem:[%s2241_s1 + $0x1b0] sm:$0xff]  ;;  %v329_v39 = vld [vmem:[%s2241_s1 + $0x2b8] sm:$0xff]  ;;  %v239_v40 = vld [vmem:[%s2241_s1 + $0x128] sm:$0xff] }
  0x24   :  { %214 = vmatpush.msrb.mxu0 %v207_v63  ;;  %297 = vmatpush.msrb.mxu2 %v292_v3  ;;  %v196_v41 = vld [vmem:[%s2241_s1 + $0xe0] sm:$0xff]  ;;  %v282_v42 = vld [vmem:[%s2241_s1 + $0x170] sm:$0xff]  ;;  %v328_v43 = vld [vmem:[%s2241_s1 + $0x278] sm:$0xff] }
  0x25   :  { %256 = vmatpush.msrb.mxu1 %v249_v1  ;;  %184 = vmatpush.msra.mxu3 %v153_v4  ;;  %v238_v44 = vld [vmem:[%s2241_s1 + $0xe8] sm:$0xff]  ;;  %v195_v45 = vld [vmem:[%s2241_s1 + $0xa0] sm:$0xff]  ;;  %v281_v46 = vld [vmem:[%s2241_s1 + $0x130] sm:$0xff] }
  0x26   :  { %215 = vmatpush.msrb.mxu0 %v206_v2  ;;  %298 = vmatpush.msrb.mxu2 %v291_v7  ;;  %v327_v47 = vld [vmem:[%s2241_s1 + $0x238] sm:$0xff]  ;;  %v237_v48 = vld [vmem:[%s2241_s1 + $0xa8] sm:$0xff]  ;;  %v194_v49 = vld [vmem:[%s2241_s1 + $0x60] sm:$0xff] }
  0x27   :  { %257 = vmatpush.msrb.mxu1 %v248_v5  ;;  %185 = vmatpush.msra.mxu3 %v152_v8  ;;  %v280_v50 = vld [vmem:[%s2241_s1 + $0xf0] sm:$0xff]  ;;  %v326_v51 = vld [vmem:[%s2241_s1 + $0x1f8] sm:$0xff]  ;;  %v236_v52 = vld [vmem:[%s2241_s1 + $0x68] sm:$0xff] }
  0x28   :  { %216 = vmatpush.msrb.mxu0 %v205_v6  ;;  %299 = vmatpush.msrb.mxu2 %v290_v11  ;;  %v193_v53 = vld [vmem:[%s2241_s1 + $0x20] sm:$0xff]  ;;  %v279_v54 = vld [vmem:[%s2241_s1 + $0xb0] sm:$0xff]  ;;  %v325_v55 = vld [vmem:[%s2241_s1 + $0x1b8] sm:$0xff] }
  0x29   :  { %258 = vmatpush.msrb.mxu1 %v247_v9  ;;  %186 = vmatpush.msra.mxu3 %v151_v12  ;;  %v235_v56 = vld [vmem:[%s2241_s1 + $0x28] sm:$0xff]  ;;  %v278_v57 = vld [vmem:[%s2241_s1 + $0x70] sm:$0xff]  ;;  %v324_v59 = vld [vmem:[%s2241_s1 + $0x178] sm:$0xff] }
  0x2a   :  { %217 = vmatpush.msrb.mxu0 %v204_v10  ;;  %300 = vmatpush.msrb.mxu2 %v289_v15  ;;  %v277_v60 = vld [vmem:[%s2241_s1 + $0x30] sm:$0xff]  ;;  %v386_v61 = vld [vmem:[%s2244_s3 + $0x3c0] sm:$0xff]  ;;  %v323_v62 = vld [vmem:[%s2241_s1 + $0x138] sm:$0xff] }
  0x2b   :  { %259 = vmatpush.msrb.mxu1 %v246_v13  ;;  %187 = vmatmul.f32.vlgmr.msra.gmra.mxu3 %v1277_v58  ;;  %v463_v63 = vld [vmem:[%s2244_s3 + $0x3c8] sm:$0xff]  ;;  %v541_v0 = vld [vmem:[%s2244_s3 + $0x3d0] sm:$0xff]  ;;  %v322_v1 = vld [vmem:[%s2241_s1 + $0xf8] sm:$0xff] }
  0x2c   :  { %218 = vmatpush.msrb.mxu0 %v203_v14  ;;  %301 = vmatpush.msrb.mxu2 %v288_v18  ;;  %v385_v2 = vld [vmem:[%s2244_s3 + $0x380] sm:$0xff]  ;;  %v462_v3 = vld [vmem:[%s2244_s3 + $0x388] sm:$0xff]  ;;  %v540_v4 = vld [vmem:[%s2244_s3 + $0x390] sm:$0xff] }
  0x2d   :  { %260 = vmatpush.msrb.mxu1 %v245_v17  ;;  %339 = vmatpush.msrb.mxu3 %v334_v20  ;;  %v321_v5 = vld [vmem:[%s2241_s1 + $0xb8] sm:$0xff]  ;;  %v384_v6 = vld [vmem:[%s2244_s3 + $0x340] sm:$0xff]  ;;  %v461_v7 = vld [vmem:[%s2244_s3 + $0x348] sm:$0xff] }
  0x2e   :  { %219 = vmatpush.msrb.mxu0 %v202_v16  ;;  %302 = vmatpush.msrb.mxu2 %v287_v22  ;;  %v539_v8 = vld [vmem:[%s2244_s3 + $0x350] sm:$0xff]  ;;  %v320_v9 = vld [vmem:[%s2241_s1 + $0x78] sm:$0xff]  ;;  %v383_v10 = vld [vmem:[%s2244_s3 + $0x300] sm:$0xff] }
  0x2f   :  { %261 = vmatpush.msrb.mxu1 %v244_v21  ;;  %340 = vmatpush.msrb.mxu3 %v333_v23  ;;  %v460_v11 = vld [vmem:[%s2244_s3 + $0x308] sm:$0xff]  ;;  %v538_v12 = vld [vmem:[%s2244_s3 + $0x310] sm:$0xff]  ;;  %v319_v13 = vld [vmem:[%s2241_s1 + $0x38] sm:$0xff] }
  0x30   :  { %220 = vmatpush.msrb.mxu0 %v201_v19  ;;  %303 = vmatpush.msrb.mxu2 %v286_v26  ;;  %v382_v14 = vld [vmem:[%s2244_s3 + $0x2c0] sm:$0xff]  ;;  %v459_v15 = vld [vmem:[%s2244_s3 + $0x2c8] sm:$0xff]  ;;  %v619_v16 = vld [vmem:[%s2244_s3 + $0x3d8] sm:$0xff] }
  0x31   :  { %262 = vmatpush.msrb.mxu1 %v243_v24  ;;  %341 = vmatpush.msrb.mxu3 %v332_v27  ;;  %v537_v17 = vld [vmem:[%s2244_s3 + $0x2d0] sm:$0xff]  ;;  %v381_v18 = vld [vmem:[%s2244_s3 + $0x280] sm:$0xff]  ;;  %v458_v19 = vld [vmem:[%s2244_s3 + $0x288] sm:$0xff] }
  0x32   :  { %221 = vmatpush.msrb.mxu0 %v200_v25  ;;  %304 = vmatpush.msrb.mxu2 %v285_v30  ;;  %v618_v20 = vld [vmem:[%s2244_s3 + $0x398] sm:$0xff]  ;;  %v536_v21 = vld [vmem:[%s2244_s3 + $0x290] sm:$0xff]  ;;  %v380_v22 = vld [vmem:[%s2244_s3 + $0x240] sm:$0xff] }
  0x33   :  { %263 = vmatpush.msrb.mxu1 %v242_v28  ;;  %342 = vmatpush.msrb.mxu3 %v331_v31  ;;  %v457_v23 = vld [vmem:[%s2244_s3 + $0x248] sm:$0xff]  ;;  %v535_v24 = vld [vmem:[%s2244_s3 + $0x250] sm:$0xff]  ;;  %v379_v25 = vld [vmem:[%s2244_s3 + $0x200] sm:$0xff] }
  0x34   :  { %222 = vmatpush.msrb.mxu0 %v199_v29  ;;  %305 = vmatpush.msrb.mxu2 %v284_v34  ;;  %v456_v26 = vld [vmem:[%s2244_s3 + $0x208] sm:$0xff]  ;;  %v616_v27 = vld [vmem:[%s2244_s3 + $0x318] sm:$0xff]  ;;  %v534_v28 = vld [vmem:[%s2244_s3 + $0x210] sm:$0xff] }
  0x35   :  { %264 = vmatpush.msrb.mxu1 %v241_v32  ;;  %343 = vmatpush.msrb.mxu3 %v330_v35  ;;  %v378_v29 = vld [vmem:[%s2244_s3 + $0x1c0] sm:$0xff]  ;;  %v455_v30 = vld [vmem:[%s2244_s3 + $0x1c8] sm:$0xff]  ;;  %v615_v31 = vld [vmem:[%s2244_s3 + $0x2d8] sm:$0xff] }
  0x36   :  { %223 = vmatpush.msrb.mxu0 %v198_v33  ;;  %306 = vmatpush.msrb.mxu2 %v283_v38  ;;  %v533_v32 = vld [vmem:[%s2244_s3 + $0x1d0] sm:$0xff]  ;;  %v377_v33 = vld [vmem:[%s2244_s3 + $0x180] sm:$0xff]  ;;  %v454_v34 = vld [vmem:[%s2244_s3 + $0x188] sm:$0xff] }
  0x37   :  { %265 = vmatpush.msrb.mxu1 %v240_v36  ;;  %344 = vmatpush.msrb.mxu3 %v329_v39  ;;  %v614_v35 = vld [vmem:[%s2244_s3 + $0x298] sm:$0xff]  ;;  %v532_v36 = vld [vmem:[%s2244_s3 + $0x190] sm:$0xff]  ;;  %v453_v38 = vld [vmem:[%s2244_s3 + $0x148] sm:$0xff] }
  0x38   :  { %224 = vmatpush.msrb.mxu0 %v197_v37  ;;  %307 = vmatpush.msrb.mxu2 %v282_v42  ;;  %v376_v37 = vld [vmem:[%s2244_s3 + $0x140] sm:$0xff]  ;;  %v613_v39 = vld [vmem:[%s2244_s3 + $0x258] sm:$0xff]  ;;  %v452_v42 = vld [vmem:[%s2244_s3 + $0x108] sm:$0xff] }
  0x39   :  { %266 = vmatpush.msrb.mxu1 %v239_v40  ;;  %345 = vmatpush.msrb.mxu3 %v328_v43  ;;  %v531_v40 = vld [vmem:[%s2244_s3 + $0x150] sm:$0xff]  ;;  %v612_v43 = vld [vmem:[%s2244_s3 + $0x218] sm:$0xff] }
  0x3a   :  { %225 = vmatpush.msrb.mxu0 %v196_v41  ;;  %308 = vmatpush.msrb.mxu2 %v281_v46  ;;  %v375_v41 = vld [vmem:[%s2244_s3 + $0x100] sm:$0xff]  ;;  %v451_v46 = vld [vmem:[%s2244_s3 + $0xc8] sm:$0xff] }
  0x3b   :  { %267 = vmatpush.msrb.mxu1 %v238_v44  ;;  %346 = vmatpush.msrb.mxu3 %v327_v47  ;;  %v530_v44 = vld [vmem:[%s2244_s3 + $0x110] sm:$0xff]  ;;  %v611_v47 = vld [vmem:[%s2244_s3 + $0x1d8] sm:$0xff] }
  0x3c   :  { %226 = vmatpush.msrb.mxu0 %v195_v45  ;;  %309 = vmatpush.msrb.mxu2 %v280_v50  ;;  %v374_v45 = vld [vmem:[%s2244_s3 + $0xc0] sm:$0xff]  ;;  %v609_v50 = vld [vmem:[%s2244_s3 + $0x158] sm:$0xff] }
  0x3d   :  { %268 = vmatpush.msrb.mxu1 %v237_v48  ;;  %347 = vmatpush.msrb.mxu3 %v326_v51  ;;  %v529_v48 = vld [vmem:[%s2244_s3 + $0xd0] sm:$0xff]  ;;  %v608_v51 = vld [vmem:[%s2244_s3 + $0x118] sm:$0xff] }
  0x3e   :  { %227 = vmatpush.msrb.mxu0 %v194_v49  ;;  %310 = vmatpush.msrb.mxu2 %v279_v54  ;;  %v610_v49 = vld [vmem:[%s2244_s3 + $0x198] sm:$0xff]  ;;  %v450_v54 = vld [vmem:[%s2244_s3 + $0x88] sm:$0xff] }
  0x3f   :  { %269 = vmatpush.msrb.mxu1 %v236_v52  ;;  %348 = vmatpush.msrb.mxu3 %v325_v55  ;;  %v607_v52 = vld [vmem:[%s2244_s3 + $0xd8] sm:$0xff]  ;;  %v528_v55 = vld [vmem:[%s2244_s3 + $0x90] sm:$0xff] }
  0x40   :  { %228 = vmatpush.msrb.mxu0 %v193_v53  ;;  %311 = vmatpush.msrb.mxu2 %v278_v57  ;;  %v373_v53 = vld [vmem:[%s2244_s3 + $0x80] sm:$0xff] }
  0x41   :  { %229 = vmatmul.f32.vlgmr.msrb.gmra.mxu0 %v1277_v58  ;;  %270 = vmatpush.msrb.mxu1 %v235_v56  ;;  %v606_v56 = vld [vmem:[%s2244_s3 + $0x98] sm:$0xff]  ;;  %v372_v57 = vld [vmem:[%s2244_s3 + $0x40] sm:$0xff] }
  0x42   :  { %349 = vmatpush.msrb.mxu3 %v324_v59  ;;  %271 = vmatmul.f32.vlgmr.msrb.gmra.mxu1 %v1277_v58  ;;  %v449_v59 = vld [vmem:[%s2244_s3 + $0x48] sm:$0xff] }
  0x43   :  { %312 = vmatpush.msrb.mxu2 %v277_v60  ;;  %391 = vmatpush.msra.mxu0 %v386_v61  ;;  %v527_v60 = vld [vmem:[%s2244_s3 + $0x50] sm:$0xff]  ;;  %v605_v61 = vld [vmem:[%s2244_s3 + $0x58] sm:$0xff] }
  0x44   :  { %350 = vmatpush.msrb.mxu3 %v323_v62  ;;  %313 = vmatmul.f32.vlgmr.msrb.gmra.mxu2 %v1277_v58  ;;  %v371_v62 = vld [vmem:[%s2244_s3] sm:$0xff] }
  0x45   :  { %468 = vmatpush.msra.mxu1 %v463_v63  ;;  %546 = vmatpush.msra.mxu2 %v541_v0  ;;  %v448_v63 = vld [vmem:[%s2244_s3 + $0x8] sm:$0xff]  ;;  %v526_v0 = vld [vmem:[%s2244_s3 + $0x10] sm:$0xff] }
  0x46   :  { %351 = vmatpush.msrb.mxu3 %v322_v1  ;;  %392 = vmatpush.msra.mxu0 %v385_v2  ;;  %v604_v1 = vld [vmem:[%s2244_s3 + $0x18] sm:$0xff]  ;;  %v853_v2 = vld [vmem:[%s2244_s3 + $0x3f0] sm:$0xff] }
  0x47   :  { %469 = vmatpush.msra.mxu1 %v462_v3  ;;  %547 = vmatpush.msra.mxu2 %v540_v4  ;;  %v931_v3 = vld [vmem:[%s2244_s3 + $0x3f8] sm:$0xff]  ;;  %v852_v4 = vld [vmem:[%s2244_s3 + $0x3b0] sm:$0xff] }
  0x48   :  { %352 = vmatpush.msrb.mxu3 %v321_v5  ;;  %393 = vmatpush.msra.mxu0 %v384_v6  ;;  %v930_v5 = vld [vmem:[%s2244_s3 + $0x3b8] sm:$0xff]  ;;  %v697_v6 = vld [vmem:[%s2244_s3 + $0x3e0] sm:$0xff] }
  0x49   :  { %470 = vmatpush.msra.mxu1 %v461_v7  ;;  %548 = vmatpush.msra.mxu2 %v539_v8  ;;  %v775_v7 = vld [vmem:[%s2244_s3 + $0x3e8] sm:$0xff]  ;;  %v851_v8 = vld [vmem:[%s2244_s3 + $0x370] sm:$0xff] }
  0x4a   :  { %353 = vmatpush.msrb.mxu3 %v320_v9  ;;  %394 = vmatpush.msra.mxu0 %v383_v10  ;;  %v929_v9 = vld [vmem:[%s2244_s3 + $0x378] sm:$0xff]  ;;  %v696_v10 = vld [vmem:[%s2244_s3 + $0x3a0] sm:$0xff] }
  0x4b   :  { %471 = vmatpush.msra.mxu1 %v460_v11  ;;  %549 = vmatpush.msra.mxu2 %v538_v12  ;;  %v774_v11 = vld [vmem:[%s2244_s3 + $0x3a8] sm:$0xff]  ;;  %v850_v12 = vld [vmem:[%s2244_s3 + $0x330] sm:$0xff] }
  0x4c   :  { %354 = vmatpush.msrb.mxu3 %v319_v13  ;;  %395 = vmatpush.msra.mxu0 %v382_v14  ;;  %v928_v13 = vld [vmem:[%s2244_s3 + $0x338] sm:$0xff]  ;;  %v695_v14 = vld [vmem:[%s2244_s3 + $0x360] sm:$0xff] }
  0x4d   :  { %355 = vmatmul.f32.vlgmr.msrb.gmra.mxu3 %v1277_v58  ;;  %472 = vmatpush.msra.mxu1 %v459_v15  ;;  %v617_v58 = vld [vmem:[%s2244_s3 + $0x358] sm:$0xff]  ;;  %v773_v15 = vld [vmem:[%s2244_s3 + $0x368] sm:$0xff] }
  0x4e   :  { %624 = vmatpush.msra.mxu3 %v619_v16  ;;  %550 = vmatpush.msra.mxu2 %v537_v17  ;;  %v849_v16 = vld [vmem:[%s2244_s3 + $0x2f0] sm:$0xff]  ;;  %v927_v17 = vld [vmem:[%s2244_s3 + $0x2f8] sm:$0xff] }
  0x4f   :  { %396 = vmatpush.msra.mxu0 %v381_v18  ;;  %473 = vmatpush.msra.mxu1 %v458_v19  ;;  %v694_v18 = vld [vmem:[%s2244_s3 + $0x320] sm:$0xff]  ;;  %v772_v19 = vld [vmem:[%s2244_s3 + $0x328] sm:$0xff] }
  0x50   :  { %625 = vmatpush.msra.mxu3 %v618_v20  ;;  %551 = vmatpush.msra.mxu2 %v536_v21  ;;  %v848_v20 = vld [vmem:[%s2244_s3 + $0x2b0] sm:$0xff]  ;;  %v926_v21 = vld [vmem:[%s2244_s3 + $0x2b8] sm:$0xff] }
  0x51   :  { %397 = vmatpush.msra.mxu0 %v380_v22  ;;  %474 = vmatpush.msra.mxu1 %v457_v23  ;;  %v693_v22 = vld [vmem:[%s2244_s3 + $0x2e0] sm:$0xff]  ;;  %v771_v23 = vld [vmem:[%s2244_s3 + $0x2e8] sm:$0xff] }
  0x52   :  { %626 = vmatpush.msra.mxu3 %v617_v58  ;;  %552 = vmatpush.msra.mxu2 %v535_v24  ;;  %v1054_v58 = vld [vmem:[%s2243_s2] ss:$0 sm:$0xff]  ;;  %v847_v24 = vld [vmem:[%s2244_s3 + $0x270] sm:$0xff] }
  0x53   :  { %398 = vmatpush.msra.mxu0 %v379_v25  ;;  %475 = vmatpush.msra.mxu1 %v456_v26  ;;  %v925_v25 = vld [vmem:[%s2244_s3 + $0x278] sm:$0xff]  ;;  %v692_v26 = vld [vmem:[%s2244_s3 + $0x2a0] sm:$0xff] }
  0x54   :  { %627 = vmatpush.msra.mxu3 %v616_v27  ;;  %553 = vmatpush.msra.mxu2 %v534_v28  ;;  %v1055_v27 = vld [vmem:[%s2243_s2 + $0x1] ss:$0 sm:$0xff]  ;;  %v770_v28 = vld [vmem:[%s2244_s3 + $0x2a8] sm:$0xff] }
  0x55   :  { %399 = vmatpush.msra.mxu0 %v378_v29  ;;  %476 = vmatpush.msra.mxu1 %v455_v30 }
  0x56   :  { %628 = vmatpush.msra.mxu3 %v615_v31  ;;  %554 = vmatpush.msra.mxu2 %v533_v32 }
  0x57   :  { %400 = vmatpush.msra.mxu0 %v377_v33  ;;  %477 = vmatpush.msra.mxu1 %v454_v34  ;;  %v846_v33 = vld [vmem:[%s2244_s3 + $0x230] sm:$0xff]  ;;  %v924_v34 = vld [vmem:[%s2244_s3 + $0x238] sm:$0xff] }
  0x58   :  { %629 = vmatpush.msra.mxu3 %v614_v35  ;;  %555 = vmatpush.msra.mxu2 %v532_v36  ;;  %v691_v35 = vld [vmem:[%s2244_s3 + $0x260] sm:$0xff]  ;;  %v769_v36 = vld [vmem:[%s2244_s3 + $0x268] sm:$0xff] }
  0x59   :  { %401 = vmatpush.msra.mxu0 %v376_v37  ;;  %478 = vmatpush.msra.mxu1 %v453_v38  ;;  %v845_v38 = vld [vmem:[%s2244_s3 + $0x1f0] sm:$0xff] }
  0x5a   :  { %630 = vmatpush.msra.mxu3 %v613_v39  ;;  %556 = vmatpush.msra.mxu2 %v531_v40  ;;  %v923_v39 = vld [vmem:[%s2244_s3 + $0x1f8] sm:$0xff]  ;;  %v690_v40 = vld [vmem:[%s2244_s3 + $0x220] sm:$0xff] }
  0x5b   :  { %402 = vmatpush.msra.mxu0 %v375_v41  ;;  %479 = vmatpush.msra.mxu1 %v452_v42  ;;  %v768_v41 = vld [vmem:[%s2244_s3 + $0x228] sm:$0xff]  ;;  %v844_v42 = vld [vmem:[%s2244_s3 + $0x1b0] sm:$0xff] }
  0x5c   :  { %631 = vmatpush.msra.mxu3 %v612_v43  ;;  %557 = vmatpush.msra.mxu2 %v530_v44  ;;  %v922_v43 = vld [vmem:[%s2244_s3 + $0x1b8] sm:$0xff]  ;;  %v689_v44 = vld [vmem:[%s2244_s3 + $0x1e0] sm:$0xff] }
  0x5d   :  { %403 = vmatpush.msra.mxu0 %v374_v45  ;;  %480 = vmatpush.msra.mxu1 %v451_v46  ;;  %v767_v45 = vld [vmem:[%s2244_s3 + $0x1e8] sm:$0xff] }
  0x5e   :  { %632 = vmatpush.msra.mxu3 %v611_v47  ;;  %558 = vmatpush.msra.mxu2 %v529_v48  ;;  %v1056_v47 = vld [vmem:[%s2243_s2 + $0x2] ss:$0 sm:$0xff] }
  0x5f   :  { %404 = vmatpush.msra.mxu0 %v373_v53  ;;  %481 = vmatpush.msra.mxu1 %v450_v54  ;;  %v766_v53 = vld [vmem:[%s2244_s3 + $0x1a8] sm:$0xff]  ;;  %v842_v54 = vld [vmem:[%s2244_s3 + $0x130] sm:$0xff] }
  0x60   :  { %633 = vmatpush.msra.mxu3 %v610_v49  ;;  %559 = vmatpush.msra.mxu2 %v528_v55  ;;  %v920_v55 = vld [vmem:[%s2244_s3 + $0x138] sm:$0xff] }
  0x61   :  { %405 = vmatpush.msra.mxu0 %v372_v57  ;;  %482 = vmatpush.msra.mxu1 %v449_v59  ;;  %v765_v57 = vld [vmem:[%s2244_s3 + $0x168] sm:$0xff] }
  0x62   :  { %634 = vmatpush.msra.mxu3 %v609_v50  ;;  %560 = vmatpush.msra.mxu2 %v527_v60  ;;  %v843_v50 = vld [vmem:[%s2244_s3 + $0x170] sm:$0xff]  ;;  %v1057_v60 = vld [vmem:[%s2243_s2 + $0x3] ss:$0 sm:$0xff] }
  0x63   :  { %406 = vmatpush.msra.mxu0 %v371_v62  ;;  %483 = vmatpush.msra.mxu1 %v448_v63  ;;  %v841_v63 = vld [vmem:[%s2244_s3 + $0xf0] sm:$0xff] }
  0x64   :  { %635 = vmatpush.msra.mxu3 %v608_v51  ;;  %561 = vmatpush.msra.mxu2 %v526_v0  ;;  %v921_v51 = vld [vmem:[%s2244_s3 + $0x178] sm:$0xff] }
  0x65   :  { %702 = vmatpush.msrb.mxu0 %v697_v6  ;;  %780 = vmatpush.msrb.mxu1 %v775_v7  ;;  %v919_v0 = vld [vmem:[%s2244_s3 + $0xf8] sm:$0xff]  ;;  %v763_v6 = vld [vmem:[%s2244_s3 + $0xe8] sm:$0xff] }
  0x66   :  { %636 = vmatpush.msra.mxu3 %v607_v52  ;;  %858 = vmatpush.msrb.mxu2 %v853_v2  ;;  %v688_v52 = vld [vmem:[%s2244_s3 + $0x1a0] sm:$0xff]  ;;  %v764_v2 = vld [vmem:[%s2244_s3 + $0x128] sm:$0xff] }
  0x67   :  { %703 = vmatpush.msrb.mxu0 %v696_v10  ;;  %781 = vmatpush.msrb.mxu1 %v774_v11  ;;  %v917_v10 = vld [vmem:[%s2244_s3 + $0x78] sm:$0xff]  ;;  %v684_v11 = vld [vmem:[%s2244_s3 + $0xa0] sm:$0xff] }
  0x68   :  { %637 = vmatpush.msra.mxu3 %v606_v56  ;;  %859 = vmatpush.msrb.mxu2 %v852_v4  ;;  %v687_v56 = vld [vmem:[%s2244_s3 + $0x160] sm:$0xff]  ;;  %v918_v4 = vld [vmem:[%s2244_s3 + $0xb8] sm:$0xff] }
  0x69   :  { %704 = vmatpush.msrb.mxu0 %v695_v14  ;;  %782 = vmatpush.msrb.mxu1 %v773_v15  ;;  %v916_v14 = vld [vmem:[%s2244_s3 + $0x38] sm:$0xff] }
  0x6a   :  { %638 = vmatpush.msra.mxu3 %v605_v61  ;;  %860 = vmatpush.msrb.mxu2 %v851_v8  ;;  %v1058_v8 = vld [vmem:[%s2243_s2 + $0x4] ss:$0 sm:$0xff] }
  0x6b   :  { %705 = vmatpush.msrb.mxu0 %v694_v18  ;;  %783 = vmatpush.msrb.mxu1 %v772_v19  ;;  %v1059_v19 = vld [vmem:[%s2243_s2 + $0x5] ss:$0 sm:$0xff] }
  0x6c   :  { %639 = vmatpush.msra.mxu3 %v604_v1  ;;  %861 = vmatpush.msrb.mxu2 %v850_v12  ;;  %v686_v1 = vld [vmem:[%s2244_s3 + $0x120] sm:$0xff]  ;;  %v762_v12 = vld [vmem:[%s2244_s3 + $0xa8] sm:$0xff] }
  0x6d   :  { %706 = vmatpush.msrb.mxu0 %v693_v22  ;;  %784 = vmatpush.msrb.mxu1 %v771_v23 }
  0x6e   :  { %936 = vmatpush.msrb.mxu3 %v931_v3  ;;  %862 = vmatpush.msrb.mxu2 %v849_v16  ;;  %v840_v3 = vld [vmem:[%s2244_s3 + $0xb0] sm:$0xff]  ;;  %v683_v16 = vld [vmem:[%s2244_s3 + $0x60] sm:$0xff] }
  0x6f   :  { %707 = vmatpush.msrb.mxu0 %v692_v26  ;;  %785 = vmatpush.msrb.mxu1 %v770_v28 }
  0x70   :  { %937 = vmatpush.msrb.mxu3 %v930_v5  ;;  %863 = vmatpush.msrb.mxu2 %v848_v20  ;;  %v685_v5 = vld [vmem:[%s2244_s3 + $0xe0] sm:$0xff] }
  0x71   :  { %708 = vmatpush.msrb.mxu0 %v691_v35  ;;  %786 = vmatpush.msrb.mxu1 %v769_v36  ;;  %v682_v20 = vld [vmem:[%s2244_s3 + $0x20] sm:$0xff] }
  0x72   :  { %938 = vmatpush.msrb.mxu3 %v929_v9  ;;  %864 = vmatpush.msrb.mxu2 %v847_v24  ;;  %v839_v9 = vld [vmem:[%s2244_s3 + $0x70] sm:$0xff] }
  0x73   :  { %709 = vmatpush.msrb.mxu0 %v690_v40  ;;  %787 = vmatpush.msrb.mxu1 %v768_v41  ;;  %v1960_v41 = vld [vmem:[%s2245_s4 + $0x2] ss:$0 sm:$0xff] }
  0x74   :  { %939 = vmatpush.msrb.mxu3 %v928_v13  ;;  %865 = vmatpush.msrb.mxu2 %v846_v33  ;;  %v838_v13 = vld [vmem:[%s2244_s3 + $0x30] sm:$0xff] }
  0x75   :  { %710 = vmatpush.msrb.mxu0 %v689_v44  ;;  %788 = vmatpush.msrb.mxu1 %v767_v45 }
  0x76   :  { %940 = vmatpush.msrb.mxu3 %v927_v17  ;;  %866 = vmatpush.msrb.mxu2 %v845_v38  ;;  %v761_v17 = vld [vmem:[%s2244_s3 + $0x68] sm:$0xff] }
  0x77   :  { %711 = vmatpush.msrb.mxu0 %v688_v52  ;;  %789 = vmatpush.msrb.mxu1 %v766_v53 }
  0x78   :  { %941 = vmatpush.msrb.mxu3 %v926_v21  ;;  %867 = vmatpush.msrb.mxu2 %v844_v42  ;;  %v760_v21 = vld [vmem:[%s2244_s3 + $0x28] sm:$0xff]  ;;  %v1965_v42 = vld [vmem:[%s2245_s4 + $0x3] ss:$0 sm:$0xff] }
  0x79   :  { %712 = vmatpush.msrb.mxu0 %v687_v56  ;;  %790 = vmatpush.msrb.mxu1 %v765_v57 }
  0x7a   :  { %942 = vmatpush.msrb.mxu3 %v925_v25  ;;  %868 = vmatpush.msrb.mxu2 %v843_v50  ;;  %v1060_v25 = vld [vmem:[%s2243_s2 + $0x6] ss:$0 sm:$0xff] }
  0x7b   :  { %713 = vmatpush.msrb.mxu0 %v686_v1  ;;  %791 = vmatpush.msrb.mxu1 %v764_v2 }
  0x7c   :  { %943 = vmatpush.msrb.mxu3 %v924_v34  ;;  %869 = vmatpush.msrb.mxu2 %v842_v54  ;;  %v1953_v34 = vld [vmem:[%s2245_s4 + $0x1] ss:$0 sm:$0xff] }
  0x7d   :  { %714 = vmatpush.msrb.mxu0 %v685_v5  ;;  %792 = vmatpush.msrb.mxu1 %v763_v6 }
  0x7e   :  { %944 = vmatpush.msrb.mxu3 %v923_v39  ;;  %870 = vmatpush.msrb.mxu2 %v841_v63 }
  0x7f   :  { %715 = vmatpush.msrb.mxu0 %v684_v11  ;;  %793 = vmatpush.msrb.mxu1 %v762_v12 }
  0x80   :  { %945 = vmatpush.msrb.mxu3 %v922_v43  ;;  %871 = vmatpush.msrb.mxu2 %v840_v3 }
  0x81   :  { %716 = vmatpush.msrb.mxu0 %v683_v16  ;;  %794 = vmatpush.msrb.mxu1 %v761_v17 }
  0x82   :  { %946 = vmatpush.msrb.mxu3 %v921_v51  ;;  %872 = vmatpush.msrb.mxu2 %v839_v9 }
  0x83   :  { %717 = vmatpush.msrb.mxu0 %v682_v20  ;;  %795 = vmatpush.msrb.mxu1 %v760_v21 }
  0x84   :  { %947 = vmatpush.msrb.mxu3 %v920_v55  ;;  %873 = vmatpush.msrb.mxu2 %v838_v13 }
  0x86   :  { %948 = vmatpush.msrb.mxu3 %v919_v0 }
  0x88   :  { %949 = vmatpush.msrb.mxu3 %v918_v4 }
  0x8a   :  { %950 = vmatpush.msrb.mxu3 %v917_v10 }
  0x8c   :  { %951 = vmatpush.msrb.mxu3 %v916_v14 }
  0x9e   :  { %v62_v29 = vpop.f32.mrf.mxu0  ;;  %v104_v31 = vpop.f32.mrf.mxu1 }
  0x9f   :  { %v63_v30 = vadd.f32 %v1054_v58, %v62_v29  ;;  %v105_v37 = vadd.f32 %v1055_v27, %v104_v31  ;;  %v1061_v29 = vld [vmem:[%s2243_s2 + $0x7] ss:$0 sm:$0xff] }
  0xa1   :  { %v1773_v32 = vmax.f32 %v63_v30, 0.0  ;;  %v1815_v46 = vmax.f32 %v105_v37, 0.0 }
  0xa3   :  { %407 = vmatmul.f32.vlgmr.msra.gmra.mxu0 %v1773_v32  ;;  %484 = vmatmul.f32.vlgmr.msra.gmra.mxu1 %v1773_v32 }
  0xa4   :  { %562 = vmatmul.f32.vlgmr.msra.gmra.mxu2 %v1773_v32  ;;  %640 = vmatmul.f32.vlgmr.msra.gmra.mxu3 %v1773_v32 }
  0xa6   :  { %v146_v48 = vpop.f32.mrf.mxu2 }
  0xa7   :  { %v147_v49 = vadd.f32 %v1056_v47, %v146_v48 }
  0xa9   :  { %v1848_v59 = vmax.f32 %v147_v49, 0.0 }
  0xab   :  { %410 = vmatmul.f32.gmra.mxu0 %v1815_v46  ;;  %487 = vmatmul.f32.gmra.mxu1 %v1815_v46 }
  0xac   :  { %565 = vmatmul.f32.gmra.mxu2 %v1815_v46  ;;  %643 = vmatmul.f32.gmra.mxu3 %v1815_v46 }
  0xae   :  { %v188_v61 = vpop.f32.mrf.mxu3 }
  0xaf   :  { %v189_v62 = vadd.f32 %v1057_v60, %v188_v61 }
  0xb1   :  { %v1881_v7 = vmax.f32 %v189_v62, 0.0 }
  0xb3   :  { %413 = vmatmul.f32.gmra.mxu0 %v1848_v59  ;;  %490 = vmatmul.f32.gmra.mxu1 %v1848_v59 }
  0xb4   :  { %568 = vmatmul.f32.gmra.mxu2 %v1848_v59  ;;  %646 = vmatmul.f32.gmra.mxu3 %v1848_v59 }
  0xbb   :  { %416 = vmatmul.f32.gmra.mxu0 %v1881_v7  ;;  %493 = vmatmul.f32.gmra.mxu1 %v1881_v7 }
  0xbc   :  { %571 = vmatmul.f32.gmra.mxu2 %v1881_v7  ;;  %649 = vmatmul.f32.gmra.mxu3 %v1881_v7 }
  0xbe   :  { %v230_v15 = vpop.f32.mrf.mxu0 }
  0xbf   :  { %v231_v18 = vadd.f32 %v1058_v8, %v230_v15  ;;  %v272_v22 = vpop.f32.mrf.mxu1 }
  0xc0   :  { %v273_v58 = vadd.f32 %v1059_v19, %v272_v22 }
  0xc1   :  { %v233_v23 = vmax.f32 %v231_v18, 0.0 }
  0xc2   :  { %v275_v24 = vmax.f32 %v273_v58, 0.0 }
  0xc3   :  { %419 = vmatmul.f32.gmra.mxu0 %v233_v23  ;;  %496 = vmatmul.f32.gmra.mxu1 %v233_v23 }
  0xc4   :  { %574 = vmatmul.f32.gmra.mxu2 %v233_v23  ;;  %652 = vmatmul.f32.gmra.mxu3 %v233_v23 }
  0xc7   :  { %v314_v26 = vpop.f32.mrf.mxu2 }
  0xc8   :  { %v315_v27 = vadd.f32 %v1060_v25, %v314_v26 }
  0xca   :  { %v317_v28 = vmax.f32 %v315_v27, 0.0 }
  0xcb   :  { %422 = vmatmul.f32.gmra.mxu0 %v275_v24  ;;  %499 = vmatmul.f32.gmra.mxu1 %v275_v24 }
  0xcc   :  { %577 = vmatmul.f32.gmra.mxu2 %v275_v24  ;;  %655 = vmatmul.f32.gmra.mxu3 %v275_v24 }
  0xd0   :  { %v356_v30 = vpop.f32.mrf.mxu3 }
  0xd1   :  { %v357_v31 = vadd.f32 %v1061_v29, %v356_v30 }
  0xd3   :  { %425 = vmatmul.f32.gmra.mxu0 %v317_v28  ;;  %502 = vmatmul.f32.gmra.mxu1 %v317_v28  ;;  %v359_v33 = vmax.f32 %v357_v31, 0.0 }
  0xd4   :  { %580 = vmatmul.f32.gmra.mxu2 %v317_v28  ;;  %658 = vmatmul.f32.gmra.mxu3 %v317_v28 }
  0xdb   :  { %428 = vmatmul.f32.gmra.mxu0 %v359_v33  ;;  %505 = vmatmul.f32.gmra.mxu1 %v359_v33 }
  0xdc   :  { %583 = vmatmul.f32.gmra.mxu2 %v359_v33  ;;  %661 = vmatmul.f32.gmra.mxu3 %v359_v33 }
  0xe3   :  { %718 = vmatmul.f32.vlgmr.msrb.gmra.mxu0 %v1773_v32  ;;  %796 = vmatmul.f32.vlgmr.msrb.gmra.mxu1 %v1773_v32 }
  0xe4   :  { %874 = vmatmul.f32.vlgmr.msrb.gmra.mxu2 %v1773_v32  ;;  %952 = vmatmul.f32.vlgmr.msrb.gmra.mxu3 %v1773_v32  ;;  %v1948_v32 = vld [vmem:[%s2245_s4] ss:$0 sm:$0xff] }
  0xeb   :  { %721 = vmatmul.f32.gmra.mxu0 %v1815_v46  ;;  %799 = vmatmul.f32.gmra.mxu1 %v1815_v46 }
  0xec   :  { %877 = vmatmul.f32.gmra.mxu2 %v1815_v46  ;;  %955 = vmatmul.f32.gmra.mxu3 %v1815_v46 }
  0xf3   :  { %724 = vmatmul.f32.gmra.mxu0 %v1848_v59  ;;  %802 = vmatmul.f32.gmra.mxu1 %v1848_v59 }
  0xf4   :  { %880 = vmatmul.f32.gmra.mxu2 %v1848_v59  ;;  %958 = vmatmul.f32.gmra.mxu3 %v1848_v59 }
  0xfb   :  { %727 = vmatmul.f32.gmra.mxu0 %v1881_v7  ;;  %805 = vmatmul.f32.gmra.mxu1 %v1881_v7 }
  0xfc   :  { %883 = vmatmul.f32.gmra.mxu2 %v1881_v7  ;;  %961 = vmatmul.f32.gmra.mxu3 %v1881_v7 }
 0x103   :  { %730 = vmatmul.f32.gmra.mxu0 %v233_v23  ;;  %808 = vmatmul.f32.gmra.mxu1 %v233_v23 }
 0x104   :  { %886 = vmatmul.f32.gmra.mxu2 %v233_v23  ;;  %964 = vmatmul.f32.gmra.mxu3 %v233_v23 }
 0x10b   :  { %733 = vmatmul.f32.gmra.mxu0 %v275_v24  ;;  %811 = vmatmul.f32.gmra.mxu1 %v275_v24 }
 0x10c   :  { %889 = vmatmul.f32.gmra.mxu2 %v275_v24  ;;  %967 = vmatmul.f32.gmra.mxu3 %v275_v24 }
 0x113   :  { %736 = vmatmul.f32.gmra.mxu0 %v317_v28  ;;  %814 = vmatmul.f32.gmra.mxu1 %v317_v28 }
 0x114   :  { %892 = vmatmul.f32.gmra.mxu2 %v317_v28  ;;  %970 = vmatmul.f32.gmra.mxu3 %v317_v28 }
 0x11b   :  { %739 = vmatmul.f32.gmra.mxu0 %v359_v33  ;;  %817 = vmatmul.f32.gmra.mxu1 %v359_v33 }
 0x11c   :  { %895 = vmatmul.f32.gmra.mxu2 %v359_v33  ;;  %973 = vmatmul.f32.gmra.mxu3 %v359_v33 }
 0x120   :  { %v408_v35 = vpop.f32.mrf.mxu0  ;;  %v485_v36 = vpop.f32.mrf.mxu1 }
 0x121   :  { %v409_v37 = vadd.f32 %v1948_v32, %v408_v35  ;;  %v486_v38 = vadd.f32 %v1953_v34, %v485_v36 }
 0x123   :  { %v432_v39 = vmax.f32 %v409_v37, 0.0  ;;  %v509_v40 = vmax.f32 %v486_v38, 0.0 }
 0x125   :  { %440 = vst [vmem:[%s2246_s5] sm:$0xff] %v432_v39 }
 0x126   :  { %998 = vst [vmem:[%s2246_s5 + $0x40] sm:$0xff] %v509_v40 }
 0x127   :  { %v563_v43 = vpop.f32.mrf.mxu2  ;;  %v641_v44 = vpop.f32.mrf.mxu3 }
 0x128   :  { %v564_v45 = vadd.f32 %v1960_v41, %v563_v43  ;;  %v642_v46 = vadd.f32 %v1965_v42, %v641_v44  ;;  %v411_v47 = vpop.f32.mrf.mxu0  ;;  %v488_v48 = vpop.f32.mrf.mxu1 }
 0x129   :  { %v412_v49 = vadd.f32 %v1948_v32, %v411_v47  ;;  %v489_v50 = vadd.f32 %v1953_v34, %v488_v48 }
 0x12a   :  { %v587_v51 = vmax.f32 %v564_v45, 0.0  ;;  %v665_v52 = vmax.f32 %v642_v46, 0.0 }
 0x12b   :  { %v433_v53 = vmax.f32 %v412_v49, 0.0  ;;  %v510_v54 = vmax.f32 %v489_v50, 0.0 }
 0x12c   :  { %1006 = vst [vmem:[%s2246_s5 + $0x80] sm:$0xff] %v587_v51 }
 0x12d   :  { %1014 = vst [vmem:[%s2246_s5 + $0xc0] sm:$0xff] %v665_v52 }
 0x12e   :  { %441 = vst [vmem:[%s2246_s5 + $0x8] sm:$0xff] %v433_v53 }
 0x12f   :  { %999 = vst [vmem:[%s2246_s5 + $0x48] sm:$0xff] %v510_v54  ;;  %v566_v55 = vpop.f32.mrf.mxu2  ;;  %v644_v56 = vpop.f32.mrf.mxu3 }
 0x130   :  { %v567_v57 = vadd.f32 %v1960_v41, %v566_v55  ;;  %v645_v59 = vadd.f32 %v1965_v42, %v644_v56  ;;  %v414_v60 = vpop.f32.mrf.mxu0  ;;  %v491_v61 = vpop.f32.mrf.mxu1 }
 0x131   :  { %v415_v62 = vadd.f32 %v1948_v32, %v414_v60  ;;  %v492_v63 = vadd.f32 %v1953_v34, %v491_v61 }
 0x132   :  { %v588_v0 = vmax.f32 %v567_v57, 0.0  ;;  %v666_v1 = vmax.f32 %v645_v59, 0.0 }
 0x133   :  { %v434_v2 = vmax.f32 %v415_v62, 0.0  ;;  %v511_v3 = vmax.f32 %v492_v63, 0.0 }
 0x134   :  { %1007 = vst [vmem:[%s2246_s5 + $0x88] sm:$0xff] %v588_v0 }
 0x135   :  { %1015 = vst [vmem:[%s2246_s5 + $0xc8] sm:$0xff] %v666_v1 }
 0x136   :  { %442 = vst [vmem:[%s2246_s5 + $0x10] sm:$0xff] %v434_v2 }
 0x137   :  { %1000 = vst [vmem:[%s2246_s5 + $0x50] sm:$0xff] %v511_v3  ;;  %v569_v4 = vpop.f32.mrf.mxu2  ;;  %v647_v5 = vpop.f32.mrf.mxu3 }
 0x138   :  { %v570_v6 = vadd.f32 %v1960_v41, %v569_v4  ;;  %v648_v7 = vadd.f32 %v1965_v42, %v647_v5  ;;  %v417_v8 = vpop.f32.mrf.mxu0  ;;  %v494_v9 = vpop.f32.mrf.mxu1  ;;  %v2082_v4 = vld [vmem:[%s2245_s4 + $0x4] ss:$0 sm:$0xff] }
 0x139   :  { %v418_v10 = vadd.f32 %v1948_v32, %v417_v8  ;;  %v495_v11 = vadd.f32 %v1953_v34, %v494_v9 }
 0x13a   :  { %v589_v12 = vmax.f32 %v570_v6, 0.0  ;;  %v667_v13 = vmax.f32 %v648_v7, 0.0 }
 0x13b   :  { %v435_v14 = vmax.f32 %v418_v10, 0.0  ;;  %v512_v15 = vmax.f32 %v495_v11, 0.0 }
 0x13c   :  { %1008 = vst [vmem:[%s2246_s5 + $0x90] sm:$0xff] %v589_v12 }
 0x13d   :  { %1016 = vst [vmem:[%s2246_s5 + $0xd0] sm:$0xff] %v667_v13 }
 0x13e   :  { %443 = vst [vmem:[%s2246_s5 + $0x18] sm:$0xff] %v435_v14 }
 0x13f   :  { %1001 = vst [vmem:[%s2246_s5 + $0x58] sm:$0xff] %v512_v15  ;;  %v572_v16 = vpop.f32.mrf.mxu2  ;;  %v650_v17 = vpop.f32.mrf.mxu3 }
 0x140   :  { %v573_v18 = vadd.f32 %v1960_v41, %v572_v16  ;;  %v651_v19 = vadd.f32 %v1965_v42, %v650_v17  ;;  %v420_v20 = vpop.f32.mrf.mxu0  ;;  %v497_v21 = vpop.f32.mrf.mxu1 }
 0x141   :  { %v421_v22 = vadd.f32 %v1948_v32, %v420_v20  ;;  %v498_v23 = vadd.f32 %v1953_v34, %v497_v21 }
 0x142   :  { %v590_v58 = vmax.f32 %v573_v18, 0.0  ;;  %v668_v24 = vmax.f32 %v651_v19, 0.0 }
 0x143   :  { %v436_v25 = vmax.f32 %v421_v22, 0.0  ;;  %v513_v26 = vmax.f32 %v498_v23, 0.0 }
 0x144   :  { %1009 = vst [vmem:[%s2246_s5 + $0x98] sm:$0xff] %v590_v58 }
 0x145   :  { %1017 = vst [vmem:[%s2246_s5 + $0xd8] sm:$0xff] %v668_v24 }
 0x146   :  { %444 = vst [vmem:[%s2246_s5 + $0x20] sm:$0xff] %v436_v25 }
 0x147   :  { %1002 = vst [vmem:[%s2246_s5 + $0x60] sm:$0xff] %v513_v26  ;;  %v575_v27 = vpop.f32.mrf.mxu2  ;;  %v653_v28 = vpop.f32.mrf.mxu3 }
 0x148   :  { %v576_v29 = vadd.f32 %v1960_v41, %v575_v27  ;;  %v654_v30 = vadd.f32 %v1965_v42, %v653_v28  ;;  %v423_v31 = vpop.f32.mrf.mxu0  ;;  %v500_v33 = vpop.f32.mrf.mxu1 }
 0x149   :  { %v424_v35 = vadd.f32 %v1948_v32, %v423_v31  ;;  %v501_v36 = vadd.f32 %v1953_v34, %v500_v33 }
 0x14a   :  { %v591_v37 = vmax.f32 %v576_v29, 0.0  ;;  %v669_v38 = vmax.f32 %v654_v30, 0.0 }
 0x14b   :  { %v437_v39 = vmax.f32 %v424_v35, 0.0  ;;  %v514_v40 = vmax.f32 %v501_v36, 0.0 }
 0x14c   :  { %1010 = vst [vmem:[%s2246_s5 + $0xa0] sm:$0xff] %v591_v37 }
 0x14d   :  { %1018 = vst [vmem:[%s2246_s5 + $0xe0] sm:$0xff] %v669_v38 }
 0x14e   :  { %445 = vst [vmem:[%s2246_s5 + $0x28] sm:$0xff] %v437_v39 }
 0x14f   :  { %1003 = vst [vmem:[%s2246_s5 + $0x68] sm:$0xff] %v514_v40  ;;  %v578_v43 = vpop.f32.mrf.mxu2  ;;  %v656_v44 = vpop.f32.mrf.mxu3 }
 0x150   :  { %v579_v45 = vadd.f32 %v1960_v41, %v578_v43  ;;  %v657_v46 = vadd.f32 %v1965_v42, %v656_v44  ;;  %v426_v47 = vpop.f32.mrf.mxu0  ;;  %v503_v48 = vpop.f32.mrf.mxu1 }
 0x151   :  { %v427_v49 = vadd.f32 %v1948_v32, %v426_v47  ;;  %v504_v50 = vadd.f32 %v1953_v34, %v503_v48 }
 0x152   :  { %v592_v51 = vmax.f32 %v579_v45, 0.0  ;;  %v670_v52 = vmax.f32 %v657_v46, 0.0 }
 0x153   :  { %v438_v53 = vmax.f32 %v427_v49, 0.0  ;;  %v515_v54 = vmax.f32 %v504_v50, 0.0 }
 0x154   :  { %1011 = vst [vmem:[%s2246_s5 + $0xa8] sm:$0xff] %v592_v51 }
 0x155   :  { %1019 = vst [vmem:[%s2246_s5 + $0xe8] sm:$0xff] %v670_v52 }
 0x156   :  { %446 = vst [vmem:[%s2246_s5 + $0x30] sm:$0xff] %v438_v53 }
 0x157   :  { %1004 = vst [vmem:[%s2246_s5 + $0x70] sm:$0xff] %v515_v54  ;;  %v581_v55 = vpop.f32.mrf.mxu2  ;;  %v659_v56 = vpop.f32.mrf.mxu3 }
 0x158   :  { %v582_v57 = vadd.f32 %v1960_v41, %v581_v55  ;;  %v660_v59 = vadd.f32 %v1965_v42, %v659_v56  ;;  %v429_v60 = vpop.f32.mrf.mxu0  ;;  %v506_v61 = vpop.f32.mrf.mxu1 }
 0x159   :  { %v430_v62 = vadd.f32 %v1948_v32, %v429_v60  ;;  %v507_v63 = vadd.f32 %v1953_v34, %v506_v61  ;;  %v2087_v32 = vld [vmem:[%s2245_s4 + $0x5] ss:$0 sm:$0xff] }
 0x15a   :  { %v593_v0 = vmax.f32 %v582_v57, 0.0  ;;  %v671_v1 = vmax.f32 %v660_v59, 0.0 }
 0x15b   :  { %v439_v2 = vmax.f32 %v430_v62, 0.0  ;;  %v516_v3 = vmax.f32 %v507_v63, 0.0 }
 0x15c   :  { %1012 = vst [vmem:[%s2246_s5 + $0xb0] sm:$0xff] %v593_v0 }
 0x15d   :  { %1020 = vst [vmem:[%s2246_s5 + $0xf0] sm:$0xff] %v671_v1 }
 0x15e   :  { %447 = vst [vmem:[%s2246_s5 + $0x38] sm:$0xff] %v439_v2 }
 0x15f   :  { %1005 = vst [vmem:[%s2246_s5 + $0x78] sm:$0xff] %v516_v3  ;;  %v584_v34 = vpop.f32.mrf.mxu2  ;;  %v662_v5 = vpop.f32.mrf.mxu3 }
 0x160   :  { %v585_v6 = vadd.f32 %v1960_v41, %v584_v34  ;;  %v663_v7 = vadd.f32 %v1965_v42, %v662_v5  ;;  %v719_v8 = vpop.f32.mrf.mxu0  ;;  %v797_v9 = vpop.f32.mrf.mxu1  ;;  %v2105_v41 = vld [vmem:[%s2245_s4 + $0x6] ss:$0 sm:$0xff]  ;;  %v2110_v42 = vld [vmem:[%s2245_s4 + $0x7] ss:$0 sm:$0xff] }
 0x161   :  { %v720_v10 = vadd.f32 %v2082_v4, %v719_v8  ;;  %v798_v11 = vadd.f32 %v2087_v32, %v797_v9 }
 0x162   :  { %v594_v12 = vmax.f32 %v585_v6, 0.0  ;;  %v672_v13 = vmax.f32 %v663_v7, 0.0 }
 0x163   :  { %v743_v14 = vmax.f32 %v720_v10, 0.0  ;;  %v821_v15 = vmax.f32 %v798_v11, 0.0 }
 0x164   :  { %1013 = vst [vmem:[%s2246_s5 + $0xb8] sm:$0xff] %v594_v12 }
 0x165   :  { %1021 = vst [vmem:[%s2246_s5 + $0xf8] sm:$0xff] %v672_v13 }
 0x166   :  { %1022 = vst [vmem:[%s2246_s5 + $0x100] sm:$0xff] %v743_v14 }
 0x167   :  { %1030 = vst [vmem:[%s2246_s5 + $0x140] sm:$0xff] %v821_v15  ;;  %v875_v16 = vpop.f32.mrf.mxu2  ;;  %v953_v17 = vpop.f32.mrf.mxu3 }
 0x168   :  { %v876_v18 = vadd.f32 %v2105_v41, %v875_v16  ;;  %v954_v19 = vadd.f32 %v2110_v42, %v953_v17  ;;  %v722_v20 = vpop.f32.mrf.mxu0  ;;  %v800_v21 = vpop.f32.mrf.mxu1 }
 0x169   :  { %v723_v22 = vadd.f32 %v2082_v4, %v722_v20  ;;  %v801_v23 = vadd.f32 %v2087_v32, %v800_v21 }
 0x16a   :  { %v899_v58 = vmax.f32 %v876_v18, 0.0  ;;  %v977_v24 = vmax.f32 %v954_v19, 0.0 }
 0x16b   :  { %v744_v25 = vmax.f32 %v723_v22, 0.0  ;;  %v822_v26 = vmax.f32 %v801_v23, 0.0 }
 0x16c   :  { %1038 = vst [vmem:[%s2246_s5 + $0x180] sm:$0xff] %v899_v58 }
 0x16d   :  { %1046 = vst [vmem:[%s2246_s5 + $0x1c0] sm:$0xff] %v977_v24 }
 0x16e   :  { %1023 = vst [vmem:[%s2246_s5 + $0x108] sm:$0xff] %v744_v25 }
 0x16f   :  { %1031 = vst [vmem:[%s2246_s5 + $0x148] sm:$0xff] %v822_v26  ;;  %v878_v27 = vpop.f32.mrf.mxu2  ;;  %v956_v28 = vpop.f32.mrf.mxu3 }
 0x170   :  { %v879_v29 = vadd.f32 %v2105_v41, %v878_v27  ;;  %v957_v30 = vadd.f32 %v2110_v42, %v956_v28  ;;  %v725_v31 = vpop.f32.mrf.mxu0  ;;  %v803_v33 = vpop.f32.mrf.mxu1 }
 0x171   :  { %v726_v35 = vadd.f32 %v2082_v4, %v725_v31  ;;  %v804_v36 = vadd.f32 %v2087_v32, %v803_v33 }
 0x172   :  { %v900_v37 = vmax.f32 %v879_v29, 0.0  ;;  %v978_v38 = vmax.f32 %v957_v30, 0.0 }
 0x173   :  { %v745_v39 = vmax.f32 %v726_v35, 0.0  ;;  %v823_v40 = vmax.f32 %v804_v36, 0.0 }
 0x174   :  { %1039 = vst [vmem:[%s2246_s5 + $0x188] sm:$0xff] %v900_v37 }
 0x175   :  { %1047 = vst [vmem:[%s2246_s5 + $0x1c8] sm:$0xff] %v978_v38 }
 0x176   :  { %1024 = vst [vmem:[%s2246_s5 + $0x110] sm:$0xff] %v745_v39 }
 0x177   :  { %1032 = vst [vmem:[%s2246_s5 + $0x150] sm:$0xff] %v823_v40  ;;  %v881_v43 = vpop.f32.mrf.mxu2  ;;  %v959_v44 = vpop.f32.mrf.mxu3 }
 0x178   :  { %v882_v45 = vadd.f32 %v2105_v41, %v881_v43  ;;  %v960_v46 = vadd.f32 %v2110_v42, %v959_v44  ;;  %v728_v47 = vpop.f32.mrf.mxu0  ;;  %v806_v48 = vpop.f32.mrf.mxu1 }
 0x179   :  { %v729_v49 = vadd.f32 %v2082_v4, %v728_v47  ;;  %v807_v50 = vadd.f32 %v2087_v32, %v806_v48 }
 0x17a   :  { %v901_v51 = vmax.f32 %v882_v45, 0.0  ;;  %v979_v52 = vmax.f32 %v960_v46, 0.0 }
 0x17b   :  { %v746_v53 = vmax.f32 %v729_v49, 0.0  ;;  %v824_v54 = vmax.f32 %v807_v50, 0.0 }
 0x17c   :  { %1040 = vst [vmem:[%s2246_s5 + $0x190] sm:$0xff] %v901_v51 }
 0x17d   :  { %1048 = vst [vmem:[%s2246_s5 + $0x1d0] sm:$0xff] %v979_v52 }
 0x17e   :  { %1025 = vst [vmem:[%s2246_s5 + $0x118] sm:$0xff] %v746_v53 }
 0x17f   :  { %1033 = vst [vmem:[%s2246_s5 + $0x158] sm:$0xff] %v824_v54  ;;  %v884_v55 = vpop.f32.mrf.mxu2  ;;  %v962_v56 = vpop.f32.mrf.mxu3 }
 0x180   :  { %v885_v57 = vadd.f32 %v2105_v41, %v884_v55  ;;  %v963_v59 = vadd.f32 %v2110_v42, %v962_v56  ;;  %v731_v60 = vpop.f32.mrf.mxu0  ;;  %v809_v61 = vpop.f32.mrf.mxu1 }
 0x181   :  { %v732_v62 = vadd.f32 %v2082_v4, %v731_v60  ;;  %v810_v63 = vadd.f32 %v2087_v32, %v809_v61 }
 0x182   :  { %v902_v0 = vmax.f32 %v885_v57, 0.0  ;;  %v980_v1 = vmax.f32 %v963_v59, 0.0 }
 0x183   :  { %v747_v2 = vmax.f32 %v732_v62, 0.0  ;;  %v825_v3 = vmax.f32 %v810_v63, 0.0 }
 0x184   :  { %1041 = vst [vmem:[%s2246_s5 + $0x198] sm:$0xff] %v902_v0 }
 0x185   :  { %1049 = vst [vmem:[%s2246_s5 + $0x1d8] sm:$0xff] %v980_v1 }
 0x186   :  { %1026 = vst [vmem:[%s2246_s5 + $0x120] sm:$0xff] %v747_v2 }
 0x187   :  { %1034 = vst [vmem:[%s2246_s5 + $0x160] sm:$0xff] %v825_v3  ;;  %v887_v34 = vpop.f32.mrf.mxu2  ;;  %v965_v5 = vpop.f32.mrf.mxu3 }
 0x188   :  { %v888_v6 = vadd.f32 %v2105_v41, %v887_v34  ;;  %v966_v7 = vadd.f32 %v2110_v42, %v965_v5  ;;  %v734_v8 = vpop.f32.mrf.mxu0  ;;  %v812_v9 = vpop.f32.mrf.mxu1 }
 0x189   :  { %v735_v10 = vadd.f32 %v2082_v4, %v734_v8  ;;  %v813_v11 = vadd.f32 %v2087_v32, %v812_v9 }
 0x18a   :  { %v903_v12 = vmax.f32 %v888_v6, 0.0  ;;  %v981_v13 = vmax.f32 %v966_v7, 0.0 }
 0x18b   :  { %v748_v14 = vmax.f32 %v735_v10, 0.0  ;;  %v826_v15 = vmax.f32 %v813_v11, 0.0 }
 0x18c   :  { %1042 = vst [vmem:[%s2246_s5 + $0x1a0] sm:$0xff] %v903_v12 }
 0x18d   :  { %1050 = vst [vmem:[%s2246_s5 + $0x1e0] sm:$0xff] %v981_v13 }
 0x18e   :  { %1027 = vst [vmem:[%s2246_s5 + $0x128] sm:$0xff] %v748_v14 }
 0x18f   :  { %1035 = vst [vmem:[%s2246_s5 + $0x168] sm:$0xff] %v826_v15  ;;  %v890_v16 = vpop.f32.mrf.mxu2  ;;  %v968_v17 = vpop.f32.mrf.mxu3 }
 0x190   :  { %v891_v18 = vadd.f32 %v2105_v41, %v890_v16  ;;  %v969_v19 = vadd.f32 %v2110_v42, %v968_v17  ;;  %v737_v20 = vpop.f32.mrf.mxu0  ;;  %v815_v21 = vpop.f32.mrf.mxu1 }
 0x191   :  { %v738_v22 = vadd.f32 %v2082_v4, %v737_v20  ;;  %v816_v23 = vadd.f32 %v2087_v32, %v815_v21 }
 0x192   :  { %v904_v58 = vmax.f32 %v891_v18, 0.0  ;;  %v982_v24 = vmax.f32 %v969_v19, 0.0 }
 0x193   :  { %v749_v25 = vmax.f32 %v738_v22, 0.0  ;;  %v827_v26 = vmax.f32 %v816_v23, 0.0 }
 0x194   :  { %1043 = vst [vmem:[%s2246_s5 + $0x1a8] sm:$0xff] %v904_v58 }
 0x195   :  { %1051 = vst [vmem:[%s2246_s5 + $0x1e8] sm:$0xff] %v982_v24 }
 0x196   :  { %1028 = vst [vmem:[%s2246_s5 + $0x130] sm:$0xff] %v749_v25 }
 0x197   :  { %1036 = vst [vmem:[%s2246_s5 + $0x170] sm:$0xff] %v827_v26  ;;  %v893_v27 = vpop.f32.mrf.mxu2  ;;  %v971_v28 = vpop.f32.mrf.mxu3 }
 0x198   :  { %v894_v29 = vadd.f32 %v2105_v41, %v893_v27  ;;  %v972_v30 = vadd.f32 %v2110_v42, %v971_v28  ;;  %v740_v31 = vpop.f32.mrf.mxu0  ;;  %v818_v33 = vpop.f32.mrf.mxu1 }
 0x199   :  { %v741_v35 = vadd.f32 %v2082_v4, %v740_v31  ;;  %v819_v36 = vadd.f32 %v2087_v32, %v818_v33 }
 0x19a   :  { %v905_v37 = vmax.f32 %v894_v29, 0.0  ;;  %v983_v38 = vmax.f32 %v972_v30, 0.0 }
 0x19b   :  { %v750_v39 = vmax.f32 %v741_v35, 0.0  ;;  %v828_v40 = vmax.f32 %v819_v36, 0.0 }
 0x19c   :  { %1044 = vst [vmem:[%s2246_s5 + $0x1b0] sm:$0xff] %v905_v37 }
 0x19d   :  { %1052 = vst [vmem:[%s2246_s5 + $0x1f0] sm:$0xff] %v983_v38 }
 0x19e   :  { %1029 = vst [vmem:[%s2246_s5 + $0x138] sm:$0xff] %v750_v39 }
 0x19f   :  { %1037 = vst [vmem:[%s2246_s5 + $0x178] sm:$0xff] %v828_v40  ;;  %v896_v4 = vpop.f32.mrf.mxu2  ;;  %v974_v32 = vpop.f32.mrf.mxu3 }
 0x1a0   :  { %v897_v43 = vadd.f32 %v2105_v41, %v896_v4  ;;  %v975_v44 = vadd.f32 %v2110_v42, %v974_v32 }
 0x1a2   :  { %v906_v45 = vmax.f32 %v897_v43, 0.0  ;;  %v984_v46 = vmax.f32 %v975_v44, 0.0 }
 0x1a4   :  { %1045 = vst [vmem:[%s2246_s5 + $0x1b8] sm:$0xff] %v906_v45 }
 0x1a5   :  { %1053 = vst [vmem:[%s2246_s5 + $0x1f8] sm:$0xff] %v984_v46 }

</bundles_post_ra>
